<compile_context>
chip_gen: v7x
topology: tpu7x:2x2x1
jax: 0.10.0
libtpu: 0.0.40
codegen_flags: <defaults>
</compile_context>

<pallas_src>
import functools

import jax
import jax.numpy as jnp
from jax.experimental import pallas as pl
from jax.experimental.pallas import tpu as pltpu

EPS = 1e-12


# ---------------------------------------------------------------------------
# Kernel 1: spectral-norm statistics of the flattened weight.
#   w_flat : (Cout, K) = (Cout, Cin*kh*kw)    (PyTorch w.view(height, -1))
#   u      : (Cout, 1) left singular-vector estimate
# One power iteration (power_iterations = 1, as in the PyTorch module):
#   v     = l2normalize(W^T u)
#   u_new = l2normalize(W v)
#   sigma = u_new . (W v)   ( == ||W v|| up to the 1e-12 eps )
# Only sigma (1,1) and u_new (Cout,1) are emitted; the weight is never
# rewritten.  The mat-vecs are VPU broadcast-multiplies + cross-lane/sublane
# reduces (XLU): no MXU matvec and no in-kernel transpose of W.  Norms /
# reciprocal are kept exact (not approx) because sigma feeds the
# 1e-4-tolerance output scale.
# ---------------------------------------------------------------------------
def _sigma_kernel(w_ref, u_ref, sigma_ref, u_new_ref):
    w = w_ref[...].astype(jnp.float32)                        # (Cout, K)
    u = u_ref[...].astype(jnp.float32)                        # (Cout, 1)

    v = jnp.sum(w * u, axis=0, keepdims=True)                 # (1, K)  = W^T u
    v = v / (jnp.sqrt(jnp.sum(v * v, keepdims=True)) + EPS)   # l2normalize

    wv = jnp.sum(w * v, axis=1, keepdims=True)                # (Cout,1) = W v
    nwv = jnp.sqrt(jnp.sum(wv * wv, keepdims=True))           # (1, 1) ||W v||

    sigma_ref[...] = nwv                                      # sigma = u_new.(W v)
    u_new_ref[...] = wv / (nwv + EPS)                         # updated u buffer


def spectral_norm_sigma(w_bar, u):
    """w_bar: (Cout, Cin, kh, kw), u: (Cout,) -> (sigma (1,1) f32, u_new (Cout,))."""
    cout = w_bar.shape[0]
    w_flat = w_bar.reshape(cout, -1).astype(jnp.float32)
    sigma, u_new = pl.pallas_call(
        _sigma_kernel,
        out_shape=(jax.ShapeDtypeStruct((1, 1), jnp.float32),
                   jax.ShapeDtypeStruct((cout, 1), jnp.float32)),
    )(w_flat, u.reshape(cout, 1).astype(jnp.float32))
    return sigma, u_new.reshape(cout)


# ---------------------------------------------------------------------------
# Kernel 2: fused (im2col-free) stride-1 "same" conv + 1/sigma scale + bias.
# One image per grid step; the kh*kw taps are accumulated in vregs/VMEM.
# ---------------------------------------------------------------------------
def _conv_sn_kernel(x_ref, w_ref, b_ref, col_ref, sigma_ref, o_ref, *,
                    H, W, kh, kw, pad):
    """
    x_ref    : (1, L, Cin)  zero-padded, channels-last, pixel-flattened image,
                            L = (H + 2*pad)*W + 2*pad
    w_ref    : (kh*kw, Cin, Cout_pad)  pre-transposed, lane-padded weight taps
    b_ref    : (1, Cout_pad)           lane-padded bias (f32)
    col_ref  : (H*W, 1) int32          x-coordinate of each output pixel
    sigma_ref: (1, 1) f32 in SMEM      spectral norm of the weight
    o_ref    : (1, H*W, Cout_pad)      lane-dense output slab (f32)
    """
    hw = H * W
    cin = x_ref.shape[-1]
    col = col_ref[...]                                        # (HW, 1) int32

    # Unique per-dx column-validity masks (the mask does not depend on dy).
    # Compute + broadcast each one exactly once; the unrolled tap loop below
    # only reuses them (JAX does not CSE broadcast_in_dim, so doing this
    # inside the loop would emit kh copies per boundary tap).
    masks = {}
    for dx in range(kw):
        lo, hi = pad - dx, W + pad - dx
        if lo > 0 or hi < W:                                  # boundary tap
            valid = (col >= lo) & (col < hi)                  # (HW, 1) bool
            masks[dx] = jnp.broadcast_to(valid, (hw, cin))    # (HW, Cin)

    acc = jnp.zeros((hw, o_ref.shape[-1]), jnp.float32)
    for dy in range(kh):
        for dx in range(kw):
            tap = dy * kw + dx
            off = dy * W + dx          # static shift into the flattened image
            slab = x_ref[0, pl.ds(off, hw), :]                # (HW, Cin)
            if dx in masks:            # zero pixels whose source column is OOB
                slab = jnp.where(masks[dx], slab, jnp.zeros_like(slab))
            acc = acc + jnp.dot(slab, w_ref[tap],
                                preferred_element_type=jnp.float32)

    inv_sigma = 1.0 / sigma_ref[0, 0]  # exact reciprocal (tolerance-critical)
    o_ref[0] = (acc * inv_sigma + b_ref[...]).astype(o_ref.dtype)


def conv2d_spectral_norm(x, w_bar, bias, sigma, *, pad=1,
                         compute_dtype=jnp.float32):
    """Stride-1 'same' Conv2d with weight scaled by 1/sigma. NCHW in / NCHW out.

    compute_dtype=jnp.bfloat16 halves HBM traffic for the activations/weights
    on v6e/v7x (f32 accumulation and f32 bias/scale math are kept).
    """
    n, cin, h, w = x.shape
    cout, cin_w, kh, kw = w_bar.shape
    assert cin_w == cin
    # fused shift trick assumes odd kernel + 'same' padding (Conv2d(k=3, p=1))
    assert kh == 2 * pad + 1 and kw == 2 * pad + 1
    hw = h * w
    cout_pad = pl.cdiv(cout, 128) * 128       # lane-dense output width

    # One-pass input prep (vs 9x im2col): NCHW -> NHWC, pad H, flatten pixels,
    # then pad the flat axis by `pad` so every tap shift is a non-negative
    # static offset.  (With an NHWC producer the transpose disappears.)
    x_nhwc = jnp.transpose(x, (0, 2, 3, 1))
    x_nhwc = jnp.pad(x_nhwc, ((0, 0), (pad, pad), (0, 0), (0, 0)))
    x_flat = x_nhwc.reshape(n, (h + 2 * pad) * w, cin)
    x_flat = jnp.pad(x_flat, ((0, 0), (pad, pad), (0, 0))).astype(compute_dtype)
    flat_len = x_flat.shape[1]

    # Weight: (O, I, kh, kw) -> (kh*kw, I, O_pad); pre-transposed so the kernel
    # never transposes, lane-padded so the matmuls/stores are lane-dense.
    w_taps = jnp.transpose(w_bar, (2, 3, 1, 0)).reshape(kh * kw, cin, cout)
    w_taps = jnp.pad(w_taps, ((0, 0), (0, 0), (0, cout_pad - cout)))
    w_taps = w_taps.astype(compute_dtype)
    b_p = jnp.pad(bias.reshape(1, cout).astype(jnp.float32),
                  ((0, 0), (0, cout_pad - cout)))
    col_ids = (jnp.arange(hw, dtype=jnp.int32) % w).reshape(hw, 1)

    kernel = functools.partial(_conv_sn_kernel, H=h, W=w, kh=kh, kw=kw, pad=pad)
    out_flat = pl.pallas_call(
        kernel,
        out_shape=jax.ShapeDtypeStruct((n, hw, cout_pad), jnp.float32),
        grid=(n,),                  # one image per step; batch axis -> 2 TCs on v7x
        in_specs=[
            pl.BlockSpec((1, flat_len, cin), lambda i: (i, 0, 0)),
            pl.BlockSpec((kh * kw, cin, cout_pad), lambda i: (0, 0, 0)),
            pl.BlockSpec((1, cout_pad), lambda i: (0, 0)),
            pl.BlockSpec((hw, 1), lambda i: (0, 0)),
            pl.BlockSpec(memory_space=pltpu.SMEM),            # sigma scalar
        ],
        out_specs=pl.BlockSpec((1, hw, cout_pad), lambda i: (i, 0, 0)),
        compiler_params=pltpu.CompilerParams(
            dimension_semantics=("parallel",)),
    )(x_flat, w_taps, b_p, col_ids, sigma)

    # TODO(synk): for large H*W, add an H-tile grid axis with a (kh-1)-row halo
    # (manual DMA via memory_space=pl.ANY) so each block stays inside the v7x
    # 64 MiB VMEM budget.
    out = out_flat[:, :, :cout].reshape(n, h, w, cout)
    return jnp.transpose(out, (0, 3, 1, 2))   # back to NCHW (module contract)


# ---------------------------------------------------------------------------
# SpectralNorm(Conv2d) forward: sigma via power iteration, then conv scaled by
# 1/sigma.  Returns (y, u_new) — PyTorch mutates the persistent `weight_u`
# buffer in place; here the updated u is returned functionally.
# ---------------------------------------------------------------------------
@functools.partial(jax.jit, static_argnames=("pad",))
def spectral_norm_conv2d_forward(x, w_bar, bias, u, pad=1):
    sigma, u_new = spectral_norm_sigma(w_bar, u)
    y = conv2d_spectral_norm(x, w_bar, bias, sigma, pad=pad)
    return y, u_new


def _l2normalize(v, eps=EPS):
    return v / (jnp.linalg.norm(v) + eps)


if __name__ == "__main__":
    key = jax.random.PRNGKey(0)
    k_x, k_w, k_b, k_u = jax.random.split(key, 4)

    # small shapes: batch=2, Cin=4, spatial=16x16, Cout=8, 3x3 conv, pad=1
    N, CIN, H, W = 2, 4, 16, 16
    COUT, KH, KW = 8, 3, 3

    x = jax.random.normal(k_x, (N, CIN, H, W), dtype=jnp.float32)
    w_bar = jax.random.normal(k_w, (COUT, CIN, KH, KW), dtype=jnp.float32) * 0.1
    bias = jax.random.normal(k_b, (COUT,), dtype=jnp.float32) * 0.01
    # u parameter: normal(0,1) then l2-normalized, like _make_params()
    u = _l2normalize(jax.random.normal(k_u, (COUT,), dtype=jnp.float32))

    out, u_new = spectral_norm_conv2d_forward(x, w_bar, bias, u)
    out = jax.block_until_ready(out)

    # pure-JAX reference (same math) for a sanity check
    w_flat = w_bar.reshape(COUT, -1)
    v_ref = _l2normalize(w_flat.T @ u)
    u_ref = _l2normalize(w_flat @ v_ref)
    sigma_ref = jnp.dot(u_ref, w_flat @ v_ref)
    ref = jax.lax.conv_general_dilated(
        x, w_bar / sigma_ref, window_strides=(1, 1), padding=((1, 1), (1, 1)),
        dimension_numbers=("NCHW", "OIHW", "NCHW"),
    ) + bias.reshape(1, COUT, 1, 1)

    assert out.shape == (N, COUT, H, W)
    assert jnp.allclose(out, ref, atol=1e-4, rtol=1e-4), float(
        jnp.max(jnp.abs(out - ref)))
    assert jnp.allclose(u_new, u_ref, atol=1e-5, rtol=1e-5)
    print("KERNEL_OK")
</pallas_src>

<mosaic_0001>
module attributes {stable_mosaic.version = 11 : i64} {
  func.func @_sigma_kernel(%arg0: memref<8x36xf32, #tpu.memory_space<vmem>>, %arg1: memref<8x1xf32, #tpu.memory_space<vmem>>, %arg2: memref<1x1xf32, #tpu.memory_space<vmem>>, %arg3: memref<8x1xf32, #tpu.memory_space<vmem>>) attributes {dimension_semantics = [], scalar_prefetch = 0 : i64, scratch_operands = 0 : i64, tpu.core_type = #tpu.core_type<tc>} {
    %c0 = arith.constant 0 : index
    %c0_0 = arith.constant 0 : index
    %0 = vector.load %arg0[%c0, %c0_0] : memref<8x36xf32, #tpu.memory_space<vmem>>, vector<8x36xf32>
    %c0_1 = arith.constant 0 : index
    %c0_2 = arith.constant 0 : index
    %1 = vector.load %arg1[%c0_1, %c0_2] : memref<8x1xf32, #tpu.memory_space<vmem>>, vector<8x1xf32>
    %2 = vector.broadcast %1 : vector<8x1xf32> to vector<8x36xf32>
    %3 = arith.mulf %0, %2 : vector<8x36xf32>
    %cst = arith.constant dense<0.000000e+00> : vector<36xf32>
    %4 = vector.multi_reduction <add>, %3, %cst [0] : vector<8x36xf32> to vector<36xf32>
    %5 = vector.shape_cast %4 : vector<36xf32> to vector<1x36xf32>
    %6 = arith.mulf %5, %5 : vector<1x36xf32>
    %7 = vector.shape_cast %6 : vector<1x36xf32> to vector<1x1x36xf32>
    %cst_3 = arith.constant dense<0.000000e+00> : vector<1xf32>
    %8 = vector.multi_reduction <add>, %7, %cst_3 [1, 2] : vector<1x1x36xf32> to vector<1xf32>
    %9 = vector.shape_cast %8 : vector<1xf32> to vector<1x1x1xf32>
    %10 = vector.extract %9[0, 0, 0] : f32 from vector<1x1x1xf32>
    %11 = vector.broadcast %10 : f32 to vector<1x1xf32>
    %12 = math.sqrt %11 : vector<1x1xf32>
    %cst_4 = arith.constant 9.99999996E-13 : f32
    %13 = vector.broadcast %cst_4 : f32 to vector<1x1xf32>
    %14 = arith.addf %12, %13 : vector<1x1xf32>
    %15 = vector.broadcast %14 : vector<1x1xf32> to vector<1x36xf32>
    %16 = arith.divf %5, %15 : vector<1x36xf32>
    %17 = vector.broadcast %16 : vector<1x36xf32> to vector<8x36xf32>
    %18 = arith.mulf %0, %17 : vector<8x36xf32>
    %cst_5 = arith.constant dense<0.000000e+00> : vector<8xf32>
    %19 = vector.multi_reduction <add>, %18, %cst_5 [1] : vector<8x36xf32> to vector<8xf32>
    %20 = vector.shape_cast %19 : vector<8xf32> to vector<8x1xf32>
    %21 = arith.mulf %20, %20 : vector<8x1xf32>
    %22 = vector.shape_cast %21 : vector<8x1xf32> to vector<1x8x1xf32>
    %cst_6 = arith.constant dense<0.000000e+00> : vector<1xf32>
    %23 = vector.multi_reduction <add>, %22, %cst_6 [1, 2] : vector<1x8x1xf32> to vector<1xf32>
    %24 = vector.shape_cast %23 : vector<1xf32> to vector<1x1x1xf32>
    %25 = vector.extract %24[0, 0, 0] : f32 from vector<1x1x1xf32>
    %26 = vector.broadcast %25 : f32 to vector<1x1xf32>
    %27 = math.sqrt %26 : vector<1x1xf32>
    %c0_7 = arith.constant 0 : index
    %c0_8 = arith.constant 0 : index
    %28 = vector.load %arg2[%c0_7, %c0_8] : memref<1x1xf32, #tpu.memory_space<vmem>>, vector<1x1xf32>
    tpu.vector_store %arg2[%c0_7, %c0_8], %27 {strides = array<i32>} : memref<1x1xf32, #tpu.memory_space<vmem>>, vector<1x1xf32>,
    %cst_9 = arith.constant 9.99999996E-13 : f32
    %29 = vector.broadcast %cst_9 : f32 to vector<1x1xf32>
    %30 = arith.addf %27, %29 : vector<1x1xf32>
    %31 = vector.broadcast %30 : vector<1x1xf32> to vector<8x1xf32>
    %32 = arith.divf %20, %31 : vector<8x1xf32>
    %c0_10 = arith.constant 0 : index
    %c0_11 = arith.constant 0 : index
    %33 = vector.load %arg3[%c0_10, %c0_11] : memref<8x1xf32, #tpu.memory_space<vmem>>, vector<8x1xf32>
    tpu.vector_store %arg3[%c0_10, %c0_11], %32 {strides = array<i32>} : memref<8x1xf32, #tpu.memory_space<vmem>>, vector<8x1xf32>,
    return
  }
}

module attributes {stable_mosaic.version = 11 : i64} {
  func.func @_conv_sn_kernel(%arg0: i32, %arg1: memref<1x290x4xf32, #tpu.memory_space<vmem>>, %arg2: memref<9x4x128xf32, #tpu.memory_space<vmem>>, %arg3: memref<1x128xf32, #tpu.memory_space<vmem>>, %arg4: memref<256x1xi32, #tpu.memory_space<vmem>>, %arg5: memref<1x1xf32, #tpu.memory_space<smem>>, %arg6: memref<1x256x128xf32, #tpu.memory_space<vmem>>) attributes {dimension_semantics = [#tpu.dimension_semantics<parallel>], iteration_bounds = array<i64: 2>, scalar_prefetch = 0 : i64, scratch_operands = 0 : i64, tpu.core_type = #tpu.core_type<tc>, window_params = [{transform_indices = @transform_0, window_bounds = array<i64: 1, 290, 4>}, {pipeline_mode = #tpu.pipeline_mode<synchronous>, transform_indices = @transform_1, window_bounds = array<i64: 9, 4, 128>}, {pipeline_mode = #tpu.pipeline_mode<synchronous>, transform_indices = @transform_2, window_bounds = array<i64: 1, 128>}, {pipeline_mode = #tpu.pipeline_mode<synchronous>, transform_indices = @transform_3, window_bounds = array<i64: 256, 1>}, {transform_indices = @transform_4, window_bounds = array<i64: 1, 1>}, {transform_indices = @transform_5, window_bounds = array<i64: 1, 256, 128>}]} {
    %c0 = arith.constant 0 : index
    %c0_0 = arith.constant 0 : index
    %0 = vector.load %arg4[%c0, %c0_0] : memref<256x1xi32, #tpu.memory_space<vmem>>, vector<256x1xi32>
    %c1_i32 = arith.constant 1 : i32
    %1 = vector.broadcast %c1_i32 : i32 to vector<256x1xi32>
    %2 = arith.cmpi sge, %0, %1 : vector<256x1xi32>
    %c17_i32 = arith.constant 17 : i32
    %3 = vector.broadcast %c17_i32 : i32 to vector<256x1xi32>
    %4 = arith.cmpi slt, %0, %3 : vector<256x1xi32>
    %5 = arith.andi %2, %4 : vector<256x1xi1>
    %6 = vector.shape_cast %5 : vector<256x1xi1> to vector<256x1xi1>
    %7 = vector.broadcast %6 : vector<256x1xi1> to vector<256x4xi1>
    %c-1_i32 = arith.constant -1 : i32
    %8 = vector.broadcast %c-1_i32 : i32 to vector<256x1xi32>
    %9 = arith.cmpi sge, %0, %8 : vector<256x1xi32>
    %c15_i32 = arith.constant 15 : i32
    %10 = vector.broadcast %c15_i32 : i32 to vector<256x1xi32>
    %11 = arith.cmpi slt, %0, %10 : vector<256x1xi32>
    %12 = arith.andi %9, %11 : vector<256x1xi1>
    %13 = vector.shape_cast %12 : vector<256x1xi1> to vector<256x1xi1>
    %14 = vector.broadcast %13 : vector<256x1xi1> to vector<256x4xi1>
    %cst = arith.constant 0.000000e+00 : f32
    %15 = vector.broadcast %cst : f32 to vector<256x128xf32>
    %c0_1 = arith.constant 0 : index
    %c0_2 = arith.constant 0 : index
    %c0_3 = arith.constant 0 : index
    %16 = vector.load %arg1[%c0_1, %c0_2, %c0_3] : memref<1x290x4xf32, #tpu.memory_space<vmem>>, vector<1x256x4xf32>
    %17 = vector.shape_cast %16 : vector<1x256x4xf32> to vector<256x4xf32>
    %cst_4 = arith.constant 0.000000e+00 : f32
    %18 = vector.broadcast %cst_4 : f32 to vector<256x4xf32>
    %19 = arith.select %7, %17, %18 : vector<256x4xi1>, vector<256x4xf32>
    %c0_5 = arith.constant 0 : index
    %c0_6 = arith.constant 0 : index
    %c0_7 = arith.constant 0 : index
    %20 = vector.load %arg2[%c0_5, %c0_6, %c0_7] : memref<9x4x128xf32, #tpu.memory_space<vmem>>, vector<1x4x128xf32>
    %21 = vector.shape_cast %20 : vector<1x4x128xf32> to vector<4x128xf32>
    %cst_8 = arith.constant dense<0.000000e+00> : vector<256x128xf32>
    %22 = tpu.matmul %19, %21, %cst_8 {dimension_numbers = #tpu.dot_dimension_numbers<[1], [0], [0], [1], [0, 0, 1, 1], [], []>} : vector<256x4xf32>, vector<4x128xf32>, vector<256x128xf32> -> vector<256x128xf32>
    %23 = arith.addf %15, %22 : vector<256x128xf32>
    %c0_9 = arith.constant 0 : index
    %c1 = arith.constant 1 : index
    %c0_10 = arith.constant 0 : index
    %24 = vector.load %arg1[%c0_9, %c1, %c0_10] : memref<1x290x4xf32, #tpu.memory_space<vmem>>, vector<1x256x4xf32>
    %25 = vector.shape_cast %24 : vector<1x256x4xf32> to vector<256x4xf32>
    %c1_11 = arith.constant 1 : index
    %c0_12 = arith.constant 0 : index
    %c0_13 = arith.constant 0 : index
    %26 = vector.load %arg2[%c1_11, %c0_12, %c0_13] : memref<9x4x128xf32, #tpu.memory_space<vmem>>, vector<1x4x128xf32>
    %27 = vector.shape_cast %26 : vector<1x4x128xf32> to vector<4x128xf32>
    %cst_14 = arith.constant dense<0.000000e+00> : vector<256x128xf32>
    %28 = tpu.matmul %25, %27, %cst_14 {dimension_numbers = #tpu.dot_dimension_numbers<[1], [0], [0], [1], [0, 0, 1, 1], [], []>} : vector<256x4xf32>, vector<4x128xf32>, vector<256x128xf32> -> vector<256x128xf32>
    %29 = arith.addf %23, %28 : vector<256x128xf32>
    %c0_15 = arith.constant 0 : index
    %c2 = arith.constant 2 : index
    %c0_16 = arith.constant 0 : index
    %30 = vector.load %arg1[%c0_15, %c2, %c0_16] : memref<1x290x4xf32, #tpu.memory_space<vmem>>, vector<1x256x4xf32>
    %31 = vector.shape_cast %30 : vector<1x256x4xf32> to vector<256x4xf32>
    %cst_17 = arith.constant 0.000000e+00 : f32
    %32 = vector.broadcast %cst_17 : f32 to vector<256x4xf32>
    %33 = arith.select %14, %31, %32 : vector<256x4xi1>, vector<256x4xf32>
    %c2_18 = arith.constant 2 : index
    %c0_19 = arith.constant 0 : index
    %c0_20 = arith.constant 0 : index
    %34 = vector.load %arg2[%c2_18, %c0_19, %c0_20] : memref<9x4x128xf32, #tpu.memory_space<vmem>>, vector<1x4x128xf32>
    %35 = vector.shape_cast %34 : vector<1x4x128xf32> to vector<4x128xf32>
    %cst_21 = arith.constant dense<0.000000e+00> : vector<256x128xf32>
    %36 = tpu.matmul %33, %35, %cst_21 {dimension_numbers = #tpu.dot_dimension_numbers<[1], [0], [0], [1], [0, 0, 1, 1], [], []>} : vector<256x4xf32>, vector<4x128xf32>, vector<256x128xf32> -> vector<256x128xf32>
    %37 = arith.addf %29, %36 : vector<256x128xf32>
    %c0_22 = arith.constant 0 : index
    %c16 = arith.constant 16 : index
    %c0_23 = arith.constant 0 : index
    %38 = vector.load %arg1[%c0_22, %c16, %c0_23] : memref<1x290x4xf32, #tpu.memory_space<vmem>>, vector<1x256x4xf32>
    %39 = vector.shape_cast %38 : vector<1x256x4xf32> to vector<256x4xf32>
    %cst_24 = arith.constant 0.000000e+00 : f32
    %40 = vector.broadcast %cst_24 : f32 to vector<256x4xf32>
    %41 = arith.select %7, %39, %40 : vector<256x4xi1>, vector<256x4xf32>
    %c3 = arith.constant 3 : index
    %c0_25 = arith.constant 0 : index
    %c0_26 = arith.constant 0 : index
    %42 = vector.load %arg2[%c3, %c0_25, %c0_26] : memref<9x4x128xf32, #tpu.memory_space<vmem>>, vector<1x4x128xf32>
    %43 = vector.shape_cast %42 : vector<1x4x128xf32> to vector<4x128xf32>
    %cst_27 = arith.constant dense<0.000000e+00> : vector<256x128xf32>
    %44 = tpu.matmul %41, %43, %cst_27 {dimension_numbers = #tpu.dot_dimension_numbers<[1], [0], [0], [1], [0, 0, 1, 1], [], []>} : vector<256x4xf32>, vector<4x128xf32>, vector<256x128xf32> -> vector<256x128xf32>
    %45 = arith.addf %37, %44 : vector<256x128xf32>
    %c0_28 = arith.constant 0 : index
    %c17 = arith.constant 17 : index
    %c0_29 = arith.constant 0 : index
    %46 = vector.load %arg1[%c0_28, %c17, %c0_29] : memref<1x290x4xf32, #tpu.memory_space<vmem>>, vector<1x256x4xf32>
    %47 = vector.shape_cast %46 : vector<1x256x4xf32> to vector<256x4xf32>
    %c4 = arith.constant 4 : index
    %c0_30 = arith.constant 0 : index
    %c0_31 = arith.constant 0 : index
    %48 = vector.load %arg2[%c4, %c0_30, %c0_31] : memref<9x4x128xf32, #tpu.memory_space<vmem>>, vector<1x4x128xf32>
    %49 = vector.shape_cast %48 : vector<1x4x128xf32> to vector<4x128xf32>
    %cst_32 = arith.constant dense<0.000000e+00> : vector<256x128xf32>
    %50 = tpu.matmul %47, %49, %cst_32 {dimension_numbers = #tpu.dot_dimension_numbers<[1], [0], [0], [1], [0, 0, 1, 1], [], []>} : vector<256x4xf32>, vector<4x128xf32>, vector<256x128xf32> -> vector<256x128xf32>
    %51 = arith.addf %45, %50 : vector<256x128xf32>
    %c0_33 = arith.constant 0 : index
    %c18 = arith.constant 18 : index
    %c0_34 = arith.constant 0 : index
    %52 = vector.load %arg1[%c0_33, %c18, %c0_34] : memref<1x290x4xf32, #tpu.memory_space<vmem>>, vector<1x256x4xf32>
    %53 = vector.shape_cast %52 : vector<1x256x4xf32> to vector<256x4xf32>
    %cst_35 = arith.constant 0.000000e+00 : f32
    %54 = vector.broadcast %cst_35 : f32 to vector<256x4xf32>
    %55 = arith.select %14, %53, %54 : vector<256x4xi1>, vector<256x4xf32>
    %c5 = arith.constant 5 : index
    %c0_36 = arith.constant 0 : index
    %c0_37 = arith.constant 0 : index
    %56 = vector.load %arg2[%c5, %c0_36, %c0_37] : memref<9x4x128xf32, #tpu.memory_space<vmem>>, vector<1x4x128xf32>
    %57 = vector.shape_cast %56 : vector<1x4x128xf32> to vector<4x128xf32>
    %cst_38 = arith.constant dense<0.000000e+00> : vector<256x128xf32>
    %58 = tpu.matmul %55, %57, %cst_38 {dimension_numbers = #tpu.dot_dimension_numbers<[1], [0], [0], [1], [0, 0, 1, 1], [], []>} : vector<256x4xf32>, vector<4x128xf32>, vector<256x128xf32> -> vector<256x128xf32>
    %59 = arith.addf %51, %58 : vector<256x128xf32>
    %c0_39 = arith.constant 0 : index
    %c32 = arith.constant 32 : index
    %c0_40 = arith.constant 0 : index
    %60 = vector.load %arg1[%c0_39, %c32, %c0_40] : memref<1x290x4xf32, #tpu.memory_space<vmem>>, vector<1x256x4xf32>
    %61 = vector.shape_cast %60 : vector<1x256x4xf32> to vector<256x4xf32>
    %cst_41 = arith.constant 0.000000e+00 : f32
    %62 = vector.broadcast %cst_41 : f32 to vector<256x4xf32>
    %63 = arith.select %7, %61, %62 : vector<256x4xi1>, vector<256x4xf32>
    %c6 = arith.constant 6 : index
    %c0_42 = arith.constant 0 : index
    %c0_43 = arith.constant 0 : index
    %64 = vector.load %arg2[%c6, %c0_42, %c0_43] : memref<9x4x128xf32, #tpu.memory_space<vmem>>, vector<1x4x128xf32>
    %65 = vector.shape_cast %64 : vector<1x4x128xf32> to vector<4x128xf32>
    %cst_44 = arith.constant dense<0.000000e+00> : vector<256x128xf32>
    %66 = tpu.matmul %63, %65, %cst_44 {dimension_numbers = #tpu.dot_dimension_numbers<[1], [0], [0], [1], [0, 0, 1, 1], [], []>} : vector<256x4xf32>, vector<4x128xf32>, vector<256x128xf32> -> vector<256x128xf32>
    %67 = arith.addf %59, %66 : vector<256x128xf32>
    %c0_45 = arith.constant 0 : index
    %c33 = arith.constant 33 : index
    %c0_46 = arith.constant 0 : index
    %68 = vector.load %arg1[%c0_45, %c33, %c0_46] : memref<1x290x4xf32, #tpu.memory_space<vmem>>, vector<1x256x4xf32>
    %69 = vector.shape_cast %68 : vector<1x256x4xf32> to vector<256x4xf32>
    %c7 = arith.constant 7 : index
    %c0_47 = arith.constant 0 : index
    %c0_48 = arith.constant 0 : index
    %70 = vector.load %arg2[%c7, %c0_47, %c0_48] : memref<9x4x128xf32, #tpu.memory_space<vmem>>, vector<1x4x128xf32>
    %71 = vector.shape_cast %70 : vector<1x4x128xf32> to vector<4x128xf32>
    %cst_49 = arith.constant dense<0.000000e+00> : vector<256x128xf32>
    %72 = tpu.matmul %69, %71, %cst_49 {dimension_numbers = #tpu.dot_dimension_numbers<[1], [0], [0], [1], [0, 0, 1, 1], [], []>} : vector<256x4xf32>, vector<4x128xf32>, vector<256x128xf32> -> vector<256x128xf32>
    %73 = arith.addf %67, %72 : vector<256x128xf32>
    %c0_50 = arith.constant 0 : index
    %c34 = arith.constant 34 : index
    %c0_51 = arith.constant 0 : index
    %74 = vector.load %arg1[%c0_50, %c34, %c0_51] : memref<1x290x4xf32, #tpu.memory_space<vmem>>, vector<1x256x4xf32>
    %75 = vector.shape_cast %74 : vector<1x256x4xf32> to vector<256x4xf32>
    %cst_52 = arith.constant 0.000000e+00 : f32
    %76 = vector.broadcast %cst_52 : f32 to vector<256x4xf32>
    %77 = arith.select %14, %75, %76 : vector<256x4xi1>, vector<256x4xf32>
    %c8 = arith.constant 8 : index
    %c0_53 = arith.constant 0 : index
    %c0_54 = arith.constant 0 : index
    %78 = vector.load %arg2[%c8, %c0_53, %c0_54] : memref<9x4x128xf32, #tpu.memory_space<vmem>>, vector<1x4x128xf32>
    %79 = vector.shape_cast %78 : vector<1x4x128xf32> to vector<4x128xf32>
    %cst_55 = arith.constant dense<0.000000e+00> : vector<256x128xf32>
    %80 = tpu.matmul %77, %79, %cst_55 {dimension_numbers = #tpu.dot_dimension_numbers<[1], [0], [0], [1], [0, 0, 1, 1], [], []>} : vector<256x4xf32>, vector<4x128xf32>, vector<256x128xf32> -> vector<256x128xf32>
    %81 = arith.addf %73, %80 : vector<256x128xf32>
    %c0_56 = arith.constant 0 : index
    %c0_57 = arith.constant 0 : index
    %82 = memref.load %arg5[%c0_56, %c0_57] : memref<1x1xf32, #tpu.memory_space<smem>>
    %cst_58 = arith.constant 1.000000e+00 : f32
    %83 = arith.divf %cst_58, %82 : f32
    %84 = vector.broadcast %83 : f32 to vector<256x128xf32>
    %85 = arith.mulf %81, %84 : vector<256x128xf32>
    %c0_59 = arith.constant 0 : index
    %c0_60 = arith.constant 0 : index
    %86 = vector.load %arg3[%c0_59, %c0_60] : memref<1x128xf32, #tpu.memory_space<vmem>>, vector<1x128xf32>
    %87 = vector.broadcast %86 : vector<1x128xf32> to vector<256x128xf32>
    %88 = arith.addf %85, %87 : vector<256x128xf32>
    %c0_61 = arith.constant 0 : index
    %c0_62 = arith.constant 0 : index
    %c0_63 = arith.constant 0 : index
    %89 = vector.load %arg6[%c0_61, %c0_62, %c0_63] : memref<1x256x128xf32, #tpu.memory_space<vmem>>, vector<1x256x128xf32>
    %90 = vector.shape_cast %89 : vector<1x256x128xf32> to vector<256x128xf32>
    %91 = vector.shape_cast %88 : vector<256x128xf32> to vector<1x256x128xf32>
    tpu.vector_store %arg6[%c0_61, %c0_62, %c0_63], %91 {strides = array<i32>} : memref<1x256x128xf32, #tpu.memory_space<vmem>>, vector<1x256x128xf32>,
    return
  }
  func.func @transform_0(%arg0: i32) -> (i32, i32, i32) {
    %c0_i32 = arith.constant 0 : i32
    %c0_i32_0 = arith.constant 0 : i32
    %c0_i32_1 = arith.constant 0 : i32
    return %arg0, %c0_i32, %c0_i32_0 : i32, i32, i32
  }
  func.func @transform_1(%arg0: i32) -> (i32, i32, i32) {
    %c0_i32 = arith.constant 0 : i32
    %c0_i32_0 = arith.constant 0 : i32
    %c0_i32_1 = arith.constant 0 : i32
    %c0_i32_2 = arith.constant 0 : i32
    return %c0_i32, %c0_i32_0, %c0_i32_1 : i32, i32, i32
  }
  func.func @transform_2(%arg0: i32) -> (i32, i32) {
    %c0_i32 = arith.constant 0 : i32
    %c0_i32_0 = arith.constant 0 : i32
    %c0_i32_1 = arith.constant 0 : i32
    return %c0_i32, %c0_i32_0 : i32, i32
  }
  func.func @transform_3(%arg0: i32) -> (i32, i32) {
    %c0_i32 = arith.constant 0 : i32
    %c0_i32_0 = arith.constant 0 : i32
    %c0_i32_1 = arith.constant 0 : i32
    return %c0_i32, %c0_i32_0 : i32, i32
  }
  func.func @transform_4(%arg0: i32) -> (i32, i32) {
    %c0_i32 = arith.constant 0 : i32
    %c0_i32_0 = arith.constant 0 : i32
    %c0_i32_1 = arith.constant 0 : i32
    return %c0_i32, %c0_i32_0 : i32, i32
  }
  func.func @transform_5(%arg0: i32) -> (i32, i32, i32) {
    %c0_i32 = arith.constant 0 : i32
    %c0_i32_0 = arith.constant 0 : i32
    %c0_i32_1 = arith.constant 0 : i32
    return %arg0, %c0_i32, %c0_i32_0 : i32, i32, i32
  }
}

</mosaic_0001>

<bundles_post_ra>
// kernel: spectral_norm_conv2d_forward.2
= control target key start
LH: loop header
LB: loop body
LE: loop exit
PB: predicated region body
PF: predicated region fallthrough
CT: control target
= control target key end

     0   :  { %s187_s0 = inlined_call_operand.vmem [shape: f32[8,36], index: 0, kind: input, shape index: {}]   ;;  %s188_s1 = inlined_call_operand.vmem [shape: f32[8,1], index: 1, kind: input, shape index: {}]   ;;  %s189_s2 = inlined_call_operand.hbm [shape: f32[1,1], index: 2, kind: output, shape index: {0}]   ;;  %s190_s3 = inlined_call_operand.vmem [shape: f32[8,1], index: 3, kind: output, shape index: {1}]  }
   0x1   :  { %v15_v0 = vld [vmem:[%s188_s1] sm:$0xff] }
   0x2   :  { %9 = vsyncpa [#allocation3], 0  ;;  %v140_v1 = vmov 0   ;;  %v14_v2 = vld [vmem:[%s187_s0] sm:$0xff]  ;;  %vm22_vm0 = vcmask 293888   ;;  %vm31_vm1 = vcmask 286720  }
   0x3   :  { %107 = vset.pattern.permute.xlu0 %v140_v1  ;;  %vm58_vm4 = vcmask 7168   ;;  %s141_s16 = smov [#allocation2]   ;;  %vm77_vm6 = vcmask 0  }
   0x4   :  { %18 = vperm.xlu0 %107, %v15_v0   ;;  %s89_s17 = sshll.u32 %s141_s16, 4  ;;  %s90_s17 = int_to_ptr.vmem [resolvable:$true] %s89_s17 }
   0x5   :  { %s116_s18 = scalar_lea.vmem %s90_s17, 16  ;;  %s120_s19 = scalar_lea.vmem %s90_s17, 32 }
   0x6   :  { %p117_p0 = scmp.ne.s32.totalorder %s90_s17, %s116_s18  ;;  %p121_p1 = scmp.lt.s32.totalorder %s90_s17, %s90_s17 }
   0x7   :  { %p122_p2 = scmp.lt.s32.totalorder %s120_s19, %s116_s18 }
   0x9   :  { %p123_p3 = por %p122_p2, %p121_p1 }
   0xb   :  { %p124_p4 = pnand %p123_p3, %p117_p0 }
  0x83   :  { %v19_v3 = vpop.permute.xlu0 %18 }
  0x84   :  { %v21_v4 = vmul.f32 %v19_v3, %v14_v2 }
  0x86   :  { %v23_v5 = vsel %vm22_vm0, %v21_v4, 0.0 }
  0x87   :  { %v24_v6 = vrot.slane %v23_v5, 4 }
  0x89   :  { %v25_v7 = vadd.f32 %v24_v6, %v23_v5 }
  0x8b   :  { %v26_v8 = vrot.slane %v25_v7, 2 }
  0x8d   :  { %v27_v9 = vadd.f32 %v26_v8, %v25_v7 }
  0x8f   :  { %v28_v10 = vrot.slane %v27_v9, 1 }
  0x91   :  { %v29_v11 = vadd.f32 %v28_v10, %v27_v9 }
  0x93   :  { %v30_v12 = vmul.f32 %v29_v11, %v29_v11 }
  0x95   :  { %v32_v13 = vsel %vm31_vm1, %v30_v12, 0.0 }
  0x96   :  { %33 = vadd.xlane.f32.xlu0 %v32_v13 }
 0x123   :  { %v34_v14 = vpop.xlane.xlu0 %33 }
 0x124   :  { %v35_v15 = vrot.slane %v34_v14, 4 }
 0x126   :  { %v36_v16 = vadd.f32 %v35_v15, %v34_v14 }
 0x128   :  { %v37_v17 = vrot.slane %v36_v16, 2 }
 0x12a   :  { %v38_v18 = vadd.f32 %v37_v17, %v36_v16 }
 0x12c   :  { %v39_v19 = vrot.slane %v38_v18, 1 }
 0x12e   :  { %v40_v20 = vadd.f32 %v39_v19, %v38_v18 }
 0x130   :  { %101 = vpush %v40_v20 }
 0x161   :  { %s102_s0 = spop %101 }
 0x162   :  { %v42_v21 = vstv %s102_s0 }
 0x163   :  { %108 = vrsqrt.f32 %v42_v21  ;;  %vm45_vm2 = vcmp.eq.f32.partialorder %v42_v21, inf  ;;  %v48_v24 = vand.u32 2147483648, %v42_v21  ;;  %vm47_vm3 = vcmp.eq.f32.partialorder %v42_v21, 0.0 }
 0x16d   :  { %v109_v22 = vpop.eup %108 }
 0x16e   :  { %v44_v23 = vmul.f32 %v109_v22, %v42_v21 }
 0x170   :  { %v46_v25 = vsel %vm45_vm2, %v42_v21, %v44_v23 }
 0x171   :  { %v49_v26 = vsel %vm47_vm3, %v48_v24, %v46_v25 }
 0x172   :  { %v50_v27 = vadd.f32 1e-12, %v49_v26 }
 0x174   :  { %110 = vrcp.f32 %v50_v27 }
 0x17e   :  { %v111_v28 = vpop.eup %110 }
 0x17f   :  { %v52_v29 = vmul.f32 %v111_v28, %v29_v11 }
 0x181   :  { %v53_v30 = vmul.f32 %v52_v29, %v14_v2 }
 0x183   :  { %v54_v31 = vsel %vm22_vm0, %v53_v30, 0.0 }
 0x184   :  { %55 = vadd.xlane.f32.xlu1 %v54_v31 }
 0x211   :  { %v56_v32 = vpop.xlane.xlu1 %55 }
 0x212   :  { %v57_v33 = vmul.f32 %v56_v32, %v56_v32 }
 0x214   :  { %v59_v34 = vsel %vm58_vm4, %v57_v33, 0.0 }
 0x215   :  { %60 = vadd.xlane.f32.xlu1 %v59_v34 }
 0x2a2   :  { %v61_v35 = vpop.xlane.xlu1 %60 }
 0x2a3   :  { %v62_v36 = vrot.slane %v61_v35, 4 }
 0x2a5   :  { %v63_v37 = vadd.f32 %v62_v36, %v61_v35 }
 0x2a7   :  { %v64_v38 = vrot.slane %v63_v37, 2 }
 0x2a9   :  { %v65_v39 = vadd.f32 %v64_v38, %v63_v37 }
 0x2ab   :  { %v66_v40 = vrot.slane %v65_v39, 1 }
 0x2ad   :  { %v67_v41 = vadd.f32 %v66_v40, %v65_v39 }
 0x2af   :  { %103 = vpush %v67_v41 }
 0x2e0   :  { %s104_s1 = spop %103 }
 0x2e1   :  { %v69_v42 = vstv %s104_s1 }
 0x2e2   :  { %112 = vrsqrt.f32 %v69_v42  ;;  %vm72_vm5 = vcmp.eq.f32.partialorder %v69_v42, inf  ;;  %v75_v45 = vand.u32 2147483648, %v69_v42  ;;  %vm74_vm7 = vcmp.eq.f32.partialorder %v69_v42, 0.0 }
 0x2ec   :  { %v113_v43 = vpop.eup %112 }
 0x2ed   :  { %v71_v44 = vmul.f32 %v113_v43, %v69_v42 }
 0x2ef   :  { %v73_v46 = vsel %vm72_vm5, %v69_v42, %v71_v44 }
 0x2f0   :  { %v76_v47 = vsel %vm74_vm7, %v75_v45, %v73_v46 }
 0x2f1   :  { %78 = vst.msk [vmem:[#allocation2] sm:$0x1] %vm77_vm6, %v76_v47  ;;  %v79_v48 = vadd.f32 1e-12, %v76_v47 }
 0x2f2   :  { %127 = shalt.err (!%p124_p4)
}
 0x2f3   :  { %s128_s22 = scalar_lea.hbm %s189_s2, 16 }
 0x2f4   :  { %p129_p5 = scmp.ne.s32.totalorder %s189_s2, %s128_s22  ;;  %p132_p6 = scmp.lt.u32.totalorder %s128_s22, %s189_s2 }
 0x2f6   :  { %p134_p7 = pnand %p132_p6, %p129_p5 }
 0x2f8   :  { %137 = shalt.err (!%p134_p7)
}
 0x2f9   :  { %92 = dma.vmem_to_hbm [thread:$0]  %s90_s17, 16, %s189_s2, [#allocation3]   ;;  %114 = vrcp.f32 %v79_v48 }
 0x303   :  { %v115_v49 = vpop.eup %114 }
 0x304   :  { %v81_v50 = vmul.f32 %v115_v49, %v56_v32 }
 0x306   :  { %82 = vst.msk [vmem:[%s190_s3] sm:$0xff] %vm58_vm4, %v81_v50 }
 0x307   :  { %138 = dma.done.wait [#allocation3], 16  }
 0x308   :  { %139 = vsyncadd [#allocation3], 4294967280 }
 0x309   :  { %100 = vsyncpa [#allocation3], 1 }

// kernel: spectral_norm_conv2d_forward.3
= control target key start
LH: loop header
LB: loop body
LE: loop exit
PB: predicated region body
PF: predicated region fallthrough
CT: control target
= control target key end

     0   :  { %s5953_s20 = smov 0   ;;  %s7821_s0 = inlined_call_operand.vmem [shape: f32[2,290,4], index: 0, kind: input, shape index: {}]   ;;  %s7822_s1 = inlined_call_operand.vmem [shape: f32[9,4,128], index: 1, kind: input, shape index: {}]   ;;  %s7823_s2 = inlined_call_operand.vmem [shape: f32[1,128], index: 2, kind: input, shape index: {}]   ;;  %s7824_s3 = inlined_call_operand.vmem [shape: s32[256,1], index: 3, kind: input, shape index: {}]   ;;  %s7825_s4 = inlined_call_operand.<no memory space> [shape: f32[1,1], index: 4, kind: input, shape index: {}]   ;;  %s7826_s5 = inlined_call_operand.vmem [shape: f32[2,256,128], index: 5, kind: output, shape index: {}]  }
   0x1   :  { %10 = sst [smem:[#allocation2]] %s7825_s4 }
   0x2 LB: > { %s4572_s21 = sadd.s32 4294967295, %s5917_s20   ;;  %p4576_p0 = scmp.ge.s32.totalorder %s5917_s20, 1  ;;  %s5917_s20 = sphi %s5953_s20, %s16_s20  }
   0x3   : > { %p188_p1 = scmp.lt.s32.totalorder %s5917_s20, 3 }
   0x5   : > { %p189_p2 = pnand %p4576_p0, %p188_p1 }
   0x7   : > { %192 = sbr.rel (%p189_p2) target bundleno = 654 (0x28e), region = 40 }
   0xe   : > { %v5964_v0 = vld [vmem:[%s7824_s3 + $0x10] sm:$0xff]  ;;  %v5969_v1 = vld [vmem:[%s7824_s3] sm:$0xff]  ;;  %v5974_v2 = vld [vmem:[%s7824_s3 + $0x18] sm:$0xff]  ;;  %v5919_v3 = vmov 0   ;;  %p6084_p3 = scmp.lt.s32.totalorder %s4572_s21, 1  ;;  %s4409_s14 = sld [smem:[#allocation2]] }
   0xf   : > { %5907 = vset.pattern.permute.xlu1 %v5919_v3  ;;  %5906 = vset.pattern.permute.xlu0 %v5919_v3  ;;  %vm516_vm0 = vcmp.ge.s32.totalorder %v5964_v0, 4294967295  ;;  %vm548_vm1 = vcmp.lt.s32.totalorder %v5964_v0, 15  ;;  %vm514_vm2 = vcmp.ge.s32.totalorder %v5969_v1, 4294967295  ;;  %vm546_vm3 = vcmp.lt.s32.totalorder %v5969_v1, 15  ;;  %v5985_v4 = vld [vmem:[%s7824_s3 + $0x8] sm:$0xff]  ;;  %v5999_v6 = vld [vmem:[%s7824_s3 + $0x20] sm:$0xff] }
  0x10   : > { %v5990_v5 = vld [vmem:[%s7824_s3 + $0x28] sm:$0xff]  ;;  %vm580_vm4 = vmand %vm516_vm0, %vm548_vm1  ;;  %vm517_vm5 = vcmp.ge.s32.totalorder %v5974_v2, 4294967295  ;;  %vm549_vm6 = vcmp.lt.s32.totalorder %v5974_v2, 15  ;;  %vm515_vm7 = vcmp.ge.s32.totalorder %v5985_v4, 4294967295  ;;  %vm547_vm8 = vcmp.lt.s32.totalorder %v5985_v4, 15  ;;  %v6010_v9 = vld [vmem:[%s7824_s3 + $0x38] sm:$0xff] }
  0x11   : > { %v612_v7 = vsel %vm580_vm4, 1, %v5919_v3  ;;  %vm578_vm9 = vmand %vm514_vm2, %vm546_vm3  ;;  %vm519_vm10 = vcmp.ge.s32.totalorder %v5990_v5, 4294967295  ;;  %vm551_vm11 = vcmp.lt.s32.totalorder %v5990_v5, 15  ;;  %vm518_vm13 = vcmp.ge.s32.totalorder %v5999_v6, 4294967295  ;;  %v6018_v11 = vld [vmem:[%s7824_s3 + $0x30] sm:$0xff]  ;;  %v6028_v13 = vld [vmem:[%s7824_s3 + $0x48] sm:$0xff] }
  0x12   : > { %649 = vperm.xlu1 %5907, %v612_v7   ;;  %v610_v8 = vsel %vm578_vm9, 1, %v5919_v3  ;;  %vm581_vm12 = vmand %vm517_vm5, %vm549_vm6  ;;  %vm550_vm14 = vcmp.lt.s32.totalorder %v5999_v6, 15  ;;  %vm521_vm2 = vcmp.ge.s32.totalorder %v6010_v9, 4294967295  ;;  %vm553_vm3 = vcmp.lt.s32.totalorder %v6010_v9, 15  ;;  %v6034_v15 = vld [vmem:[%s7824_s3 + $0x40] sm:$0xff]  ;;  %v6044_v17 = vld [vmem:[%s7824_s3 + $0x58] sm:$0xff] }
  0x13   : > { %643 = vperm.xlu0 %5906, %v610_v8   ;;  %v613_v10 = vsel %vm581_vm12, 1, %v5919_v3  ;;  %vm579_vm15 = vmand %vm515_vm7, %vm547_vm8  ;;  %vm520_vm4 = vcmp.ge.s32.totalorder %v6018_v11, 4294967295  ;;  %vm552_vm5 = vcmp.lt.s32.totalorder %v6018_v11, 15  ;;  %vm523_vm8 = vcmp.ge.s32.totalorder %v6028_v13, 4294967295  ;;  %v6050_v19 = vld [vmem:[%s7824_s3 + $0x50] sm:$0xff]  ;;  %v6060_v21 = vld [vmem:[%s7824_s3 + $0x68] sm:$0xff] }
  0x14   : > { %v611_v12 = vsel %vm579_vm15, 1, %v5919_v3  ;;  %vm583_vm0 = vmand %vm519_vm10, %vm551_vm11  ;;  %vm555_vm9 = vcmp.lt.s32.totalorder %v6028_v13, 15  ;;  %vm522_vm10 = vcmp.ge.s32.totalorder %v6034_v15, 4294967295  ;;  %vm554_vm11 = vcmp.lt.s32.totalorder %v6034_v15, 15  ;;  %v4580_v22 = vld [vmem:[%s7822_s1 + $0x4] sm:$0xf] }
  0x15   : > { %vm582_vm1 = vmand %vm518_vm13, %vm550_vm14  ;;  %v615_v14 = vsel %vm583_vm0, 1, %v5919_v3  ;;  %vm966_vm13 = vcmask 1043456   ;;  %vm525_vm15 = vcmp.ge.s32.totalorder %v6044_v17, 4294967295  ;;  %vm557_vm0 = vcmp.lt.s32.totalorder %v6044_v17, 15  ;;  %v6069_v24 = vld [vmem:[%s7824_s3 + $0x60] sm:$0xff]  ;;  %v6101_v29 = vld [vmem:[%s7824_s3 + $0x78] sm:$0xff] }
  0x16   : > { %652 = vperm.xlu1 %5907, %v613_v10   ;;  %v614_v16 = vsel %vm582_vm1, 1, %v5919_v3  ;;  %vm585_vm6 = vmand %vm521_vm2, %vm553_vm3  ;;  %vm524_vm1 = vcmp.ge.s32.totalorder %v6050_v19, 4294967295  ;;  %vm556_vm2 = vcmp.lt.s32.totalorder %v6050_v19, 15  ;;  %5186 = vmatprep.subr.msk.mxu1 %vm966_vm13, %v4580_v22  ;;  %v4715_v25 = vld [vmem:[%s7822_s1 + $0x10] sm:$0xf]  ;;  %s7999_s21 = smov (!%p6084_p3, %s4572_s21), 1 }
  0x17   : > { %646 = vperm.xlu0 %5906, %v611_v12   ;;  %vm584_vm7 = vmand %vm520_vm4, %vm552_vm5  ;;  %v617_v18 = vsel %vm585_vm6, 1, %v5919_v3  ;;  %5386 = vmatprep.subr.msk.mxu0 %vm966_vm13, %v4715_v25  ;;  %vm527_vm5 = vcmp.ge.s32.totalorder %v6060_v21, 4294967295  ;;  %vm559_vm6 = vcmp.lt.s32.totalorder %v6060_v21, 15  ;;  %v6094_v28 = vld [vmem:[%s7822_s1] sm:$0xf]  ;;  %v6116_v32 = vld [vmem:[%s7824_s3 + $0x70] sm:$0xff] }
  0x18   : > { %v616_v20 = vsel %vm584_vm7, 1, %v5919_v3  ;;  %vm587_vm12 = vmand %vm523_vm8, %vm555_vm9  ;;  %5187 = vmatpush3.msk.msra.mxu1 %vm966_vm13, %v4580_v22  ;;  %5387 = vmatpush3.msk.msra.mxu0 %vm966_vm13, %v4715_v25  ;;  %vm526_vm7 = vcmp.ge.s32.totalorder %v6069_v24, 4294967295  ;;  %vm558_vm8 = vcmp.lt.s32.totalorder %v6069_v24, 15  ;;  %v6108_v30 = vld [vmem:[%s7822_s1 + $0x14] sm:$0xf]  ;;  %v6136_v34 = vld [vmem:[%s7824_s3 + $0x80] sm:$0xff] }
  0x19   : > { %vm586_vm14 = vmand %vm522_vm10, %vm554_vm11  ;;  %v619_v23 = vsel %vm587_vm12, 1, %v5919_v3  ;;  %5236 = vmatprep.subr.msk.mxu1 %vm966_vm13, %v6094_v28  ;;  %5436 = vmatprep.subr.msk.mxu0 %vm966_vm13, %v6108_v30  ;;  %vm529_vm11 = vcmp.ge.s32.totalorder %v6101_v29, 4294967295  ;;  %vm561_vm12 = vcmp.lt.s32.totalorder %v6101_v29, 15  ;;  %s5894_s15 = smul.u32 296, %s7999_s21  ;;  %v6148_v37 = vld [vmem:[%s7824_s3 + $0x88] sm:$0xff]  ;;  %v6164_v40 = vld [vmem:[%s7824_s3 + $0x90] sm:$0xff] }
  0x1a   : > { %658 = vperm.xlu1 %5907, %v615_v14   ;;  %v618_v26 = vsel %vm586_vm14, 1, %v5919_v3  ;;  %vm6076_vm3 = vmand %vm525_vm15, %vm557_vm0  ;;  %vm528_vm14 = vcmp.ge.s32.totalorder %v6116_v32, 4294967295  ;;  %vm560_vm15 = vcmp.lt.s32.totalorder %v6116_v32, 15  ;;  %v6179_v47 = vld [vmem:[%s7824_s3 + $0x98] sm:$0xff]  ;;  %v6204_v53 = vld [vmem:[%s7824_s3 + $0xa0] sm:$0xff] }
  0x1b   : > { %655 = vperm.xlu0 %5906, %v614_v16   ;;  %vm588_vm4 = vmand %vm524_vm1, %vm556_vm2  ;;  %v621_v31 = vsel %vm6076_vm3, 1, %v5919_v3  ;;  %vm530_vm2 = vcmp.ge.s32.totalorder %v6136_v34, 4294967295  ;;  %vm562_vm3 = vcmp.lt.s32.totalorder %v6136_v34, 15  ;;  %s6155_s22 = scalar_lea.vmem %s7821_s0, %s5894_s15  ;;  %v6229_v58 = vld [vmem:[%s7824_s3 + $0xa8] sm:$0xff]  ;;  %v6246_v63 = vld [vmem:[%s7824_s3 + $0xb0] sm:$0xff]  ;;  %s4888_s15 = sshll.u32 %s7999_s21, 8 }
  0x1c   : > { %v620_v33 = vsel %vm588_vm4, 1, %v5919_v3  ;;  %vm591_vm9 = vmand %vm527_vm5, %vm559_vm6  ;;  %vm258_vm4 = vcmp.ge.s32.totalorder %v5969_v1, 1  ;;  %vm290_vm5 = vcmp.lt.s32.totalorder %v5969_v1, 17  ;;  %v835_v42 = vld [vmem:[%s6155_s22 + $0x1] sm:$0xff]  ;;  %v2363_v44 = vld [vmem:[%s6155_s22 + $0x11] sm:$0xff]  ;;  %s7717_s23 = scalar_lea.vmem %s7826_s5, %s4888_s15 }
  0x1d   : > { %vm590_vm10 = vmand %vm526_vm7, %vm558_vm8  ;;  %v623_v35 = vsel %vm591_vm9, 1, %v5919_v3  ;;  %vm531_vm8 = vcmp.ge.s32.totalorder %v6148_v37, 4294967295  ;;  %vm563_vm9 = vcmp.lt.s32.totalorder %v6148_v37, 15  ;;  %v836_v45 = vld [vmem:[%s6155_s22 + $0x9] sm:$0xff]  ;;  %v2364_v46 = vld [vmem:[%s6155_s22 + $0x19] sm:$0xff] }
  0x1e   : > { %664 = vperm.xlu1 %5907, %v617_v18   ;;  %v622_v36 = vsel %vm590_vm10, 1, %v5919_v3  ;;  %vm593_vm0 = vmand %vm529_vm11, %vm561_vm12  ;;  %vm259_vm10 = vcmp.ge.s32.totalorder %v5985_v4, 1  ;;  %vm291_vm11 = vcmp.lt.s32.totalorder %v5985_v4, 17  ;;  %v2365_v48 = vld [vmem:[%s6155_s22 + $0x21] sm:$0xff]  ;;  %v2366_v52 = vld [vmem:[%s6155_s22 + $0x29] sm:$0xff] }
  0x1f   : > { %661 = vperm.xlu0 %5906, %v616_v20   ;;  %vm592_vm1 = vmand %vm528_vm14, %vm560_vm15  ;;  %v625_v38 = vsel %vm593_vm0, 1, %v5919_v3  ;;  %vm532_vm15 = vcmp.ge.s32.totalorder %v6164_v40, 4294967295  ;;  %vm564_vm0 = vcmp.lt.s32.totalorder %v6164_v40, 15  ;;  %v2367_v54 = vld [vmem:[%s6155_s22 + $0x31] sm:$0xff]  ;;  %v2368_v57 = vld [vmem:[%s6155_s22 + $0x39] sm:$0xff] }
  0x20   : > { %v624_v39 = vsel %vm592_vm1, 1, %v5919_v3  ;;  %vm594_vm6 = vmand %vm530_vm2, %vm562_vm3  ;;  %vm869_vm1 = vcmask 31744   ;;  %vm260_vm2 = vcmp.ge.s32.totalorder %v5964_v0, 1  ;;  %vm292_vm3 = vcmp.lt.s32.totalorder %v5964_v0, 17  ;;  %v2369_v59 = vld [vmem:[%s6155_s22 + $0x41] sm:$0xff]  ;;  %v2370_v62 = vld [vmem:[%s6155_s22 + $0x49] sm:$0xff] }
  0x21   : > { %vm322_vm7 = vmand %vm258_vm4, %vm290_vm5  ;;  %v626_v41 = vsel %vm594_vm6, 1, %v5919_v3  ;;  %5188 = vmatprep.mubr.msk.f32.mxu1 %vm869_vm1, %v835_v42  ;;  %5388 = vmatprep.mubr.msk.f32.mxu0 %vm869_vm1, %v2363_v44  ;;  %vm533_vm6 = vcmp.ge.s32.totalorder %v6179_v47, 4294967295  ;;  %v2371_v0 = vld [vmem:[%s6155_s22 + $0x51] sm:$0xff]  ;;  %v2373_v8 = vld [vmem:[%s6155_s22 + $0x61] sm:$0xff] }
  0x22   : > { %670 = vperm.xlu1 %5907, %v619_v23   ;;  %v354_v43 = vsel %vm322_vm7, 1, %v5919_v3  ;;  %vm595_vm12 = vmand %vm531_vm8, %vm563_vm9  ;;  %5189 = vmatmul.mubr.msk.f32.vlgmr.msra.gmra.mrb[0].mxu1 %vm869_vm1, %v836_v45  ;;  %vm565_vm7 = vcmp.lt.s32.totalorder %v6179_v47, 15  ;;  %vm261_vm8 = vcmp.ge.s32.totalorder %v5974_v2, 1  ;;  %vm293_vm9 = vcmp.lt.s32.totalorder %v5974_v2, 17  ;;  %v6253_v2 = vld [vmem:[%s7822_s1 + $0x18] sm:$0xf] }
  0x23   : > { %667 = vperm.xlu0 %5906, %v618_v26   ;;  %vm323_vm14 = vmand %vm259_vm10, %vm291_vm11  ;;  %v627_v49 = vsel %vm595_vm12, 1, %v5919_v3  ;;  %5389 = vmatmul.mubr.msk.f32.vlgmr.msra.gmra.mrb[0].mxu0 %vm869_vm1, %v2364_v46  ;;  %vm534_vm12 = vcmp.ge.s32.totalorder %v6204_v53, 4294967295  ;;  %v6272_v7 = vld [vmem:[%s7824_s3 + $0xb8] sm:$0xff]  ;;  %v6293_v14 = vld [vmem:[%s7824_s3 + $0xc0] sm:$0xff] }
  0x24   : > { %v355_v50 = vsel %vm323_vm14, 1, %v5919_v3  ;;  %vm6188_vm4 = vmand %vm532_vm15, %vm564_vm0  ;;  %5191 = vmatprep.mubr.msk.f32.mxu1 %vm869_vm1, %v2363_v44  ;;  %5391 = vmatprep.mubr.msk.f32.mxu0 %vm869_vm1, %v2365_v48  ;;  %vm566_vm14 = vcmp.lt.s32.totalorder %v6204_v53, 15  ;;  %vm262_vm15 = vcmp.ge.s32.totalorder %v5999_v6, 1  ;;  %vm294_vm0 = vcmp.lt.s32.totalorder %v5999_v6, 17  ;;  %v2375_v16 = vld [vmem:[%s6155_s22 + $0x71] sm:$0xff]  ;;  %v6310_v22 = vld [vmem:[%s7824_s3 + $0xc8] sm:$0xff] }
  0x25   : > { %vm324_vm5 = vmand %vm260_vm2, %vm292_vm3  ;;  %5237 = vmatpush3.msk.msra.mxu1 %vm966_vm13, %v6094_v28  ;;  %v628_v55 = vsel %vm6188_vm4, 1, %v5919_v3  ;;  %5437 = vmatpush3.msk.msra.mxu0 %vm966_vm13, %v6108_v30  ;;  %vm535_vm4 = vcmp.ge.s32.totalorder %v6229_v58, 4294967295  ;;  %v2377_v23 = vld [vmem:[%s6155_s22 + $0x81] sm:$0xff]  ;;  %v6327_v27 = vld [vmem:[%s7824_s3 + $0xd0] sm:$0xff] }
  0x26   : > { %676 = vperm.xlu1 %5907, %v621_v31   ;;  %v356_v56 = vsel %vm324_vm5, 1, %v5919_v3  ;;  %vm597_vm10 = vmand %vm533_vm6, %vm565_vm7  ;;  %5192 = vmatmul.mubr.msk.f32.gmra.mrb[2].mxu1 %vm869_vm1, %v2364_v46  ;;  %vm567_vm5 = vcmp.lt.s32.totalorder %v6229_v58, 15  ;;  %vm263_vm6 = vcmp.ge.s32.totalorder %v5990_v5, 1  ;;  %vm295_vm7 = vcmp.lt.s32.totalorder %v5990_v5, 17  ;;  %v2372_v5 = vld [vmem:[%s6155_s22 + $0x59] sm:$0xff]  ;;  %v853_v31 = vld [vmem:[%s6155_s22 + $0x91] sm:$0xff] }
  0x27   : > { %673 = vperm.xlu0 %5906, %v620_v33   ;;  %5392 = vmatmul.mubr.msk.f32.gmra.mrb[2].mxu0 %vm869_vm1, %v2366_v52  ;;  %vm325_vm11 = vmand %vm261_vm8, %vm293_vm9  ;;  %v629_v60 = vsel %vm597_vm10, 1, %v5919_v3  ;;  %vm536_vm10 = vcmp.ge.s32.totalorder %v6246_v63, 4294967295  ;;  %v857_v44 = vld [vmem:[%s6155_s22 + $0xb1] sm:$0xff] }
  0x28   : > { %5194 = vmatprep.mubr.msk.f32.mxu1 %vm869_vm1, %v2365_v48  ;;  %5394 = vmatprep.mubr.msk.f32.mxu0 %vm869_vm1, %v2367_v54  ;;  %v357_v61 = vsel %vm325_vm11, 1, %v5919_v3  ;;  %vm598_vm2 = vmand %vm534_vm12, %vm566_vm14  ;;  %vm568_vm11 = vcmp.lt.s32.totalorder %v6246_v63, 15  ;;  %vm264_vm12 = vcmp.ge.s32.totalorder %v6018_v11, 1  ;;  %vm296_vm14 = vcmp.lt.s32.totalorder %v6018_v11, 17  ;;  %v2374_v11 = vld [vmem:[%s6155_s22 + $0x69] sm:$0xff] }
  0x29   : > { %vm326_vm3 = vmand %vm262_vm15, %vm294_vm0  ;;  %v630_v1 = vsel %vm598_vm2, 1, %v5919_v3  ;;  %5486 = vmatprep.subr.msk.mxu0 %vm966_vm13, %v6253_v2  ;;  %vm537_vm2 = vcmp.ge.s32.totalorder %v6272_v7, 4294967295  ;;  %v6393_v48 = vld [vmem:[%s7824_s3 + $0xf0] sm:$0xff] }
  0x2a   : > { %682 = vperm.xlu1 %5907, %v623_v35   ;;  %5195 = vmatmul.mubr.msk.f32.gmra.mrb[4].mxu1 %vm869_vm1, %v2366_v52  ;;  %v358_v4 = vsel %vm326_vm3, 1, %v5919_v3  ;;  %vm6256_vm8 = vmand %vm535_vm4, %vm567_vm5  ;;  %vm569_vm3 = vcmp.lt.s32.totalorder %v6272_v7, 15  ;;  %vm265_vm4 = vcmp.ge.s32.totalorder %v6010_v9, 1  ;;  %vm297_vm5 = vcmp.lt.s32.totalorder %v6010_v9, 17  ;;  %v2376_v9 = vld [vmem:[%s6155_s22 + $0x79] sm:$0xff] }
  0x2b   : > { %679 = vperm.xlu0 %5906, %v622_v36   ;;  %5395 = vmatmul.mubr.msk.f32.gmra.mrb[4].mxu0 %vm869_vm1, %v2368_v57  ;;  %vm327_vm9 = vmand %vm263_vm6, %vm295_vm7  ;;  %v631_v10 = vsel %vm6256_vm8, 1, %v5919_v3  ;;  %vm538_vm8 = vcmp.ge.s32.totalorder %v6293_v14, 4294967295  ;;  %v6354_v36 = vld [vmem:[%s7822_s1 + $0x8] sm:$0xf]  ;;  %v6408_v52 = vld [vmem:[%s7824_s3 + $0xf8] sm:$0xff] }
  0x2c   : > { %5197 = vmatprep.mubr.msk.f32.mxu1 %vm869_vm1, %v2367_v54  ;;  %5397 = vmatprep.mubr.msk.f32.mxu0 %vm869_vm1, %v2369_v59  ;;  %v359_v12 = vsel %vm327_vm9, 1, %v5919_v3  ;;  %vm600_vm15 = vmand %vm536_vm10, %vm568_vm11  ;;  %vm570_vm9 = vcmp.lt.s32.totalorder %v6293_v14, 15  ;;  %vm266_vm10 = vcmp.ge.s32.totalorder %v6034_v15, 1  ;;  %vm298_vm11 = vcmp.lt.s32.totalorder %v6034_v15, 17  ;;  %v2378_v15 = vld [vmem:[%s6155_s22 + $0x89] sm:$0xff]  ;;  %v861_v54 = vld [vmem:[%s6155_s22 + $0xd1] sm:$0xff] }
  0x2d   : > { %vm328_vm0 = vmand %vm264_vm12, %vm296_vm14  ;;  %v632_v18 = vsel %vm600_vm15, 1, %v5919_v3  ;;  %vm539_vm15 = vcmp.ge.s32.totalorder %v6310_v22, 4294967295  ;;  %5286 = vmatprep.subr.msk.mxu1 %vm966_vm13, %v6354_v36 }
  0x2e   : > { %688 = vperm.xlu1 %5907, %v625_v38   ;;  %5198 = vmatmul.mubr.msk.f32.gmra.mrb[6].mxu1 %vm869_vm1, %v2368_v57  ;;  %v360_v20 = vsel %vm328_vm0, 1, %v5919_v3  ;;  %vm601_vm6 = vmand %vm537_vm2, %vm569_vm3  ;;  %vm571_vm0 = vcmp.lt.s32.totalorder %v6310_v22, 15  ;;  %vm267_vm2 = vcmp.ge.s32.totalorder %v6028_v13, 1  ;;  %vm299_vm3 = vcmp.lt.s32.totalorder %v6028_v13, 17  ;;  %v6341_v13 = vld [vmem:[%s7824_s3 + $0xd8] sm:$0xff]  ;;  %v6361_v38 = vld [vmem:[%s7824_s3 + $0xe0] sm:$0xff] }
  0x2f   : > { %685 = vperm.xlu0 %5906, %v624_v39   ;;  %5398 = vmatmul.mubr.msk.f32.gmra.mrb[6].mxu0 %vm869_vm1, %v2370_v62  ;;  %vm329_vm7 = vmand %vm265_vm4, %vm297_vm5  ;;  %v633_v25 = vsel %vm601_vm6, 1, %v5919_v3  ;;  %vm540_vm6 = vcmp.ge.s32.totalorder %v6327_v27, 4294967295  ;;  %v855_v39 = vld [vmem:[%s6155_s22 + $0xa1] sm:$0xff] }
  0x30   : > { %5200 = vmatprep.mubr.msk.f32.mxu1 %vm869_vm1, %v2369_v59  ;;  %5400 = vmatprep.mubr.msk.f32.mxu0 %vm869_vm1, %v2371_v0  ;;  %v361_v26 = vsel %vm329_vm7, 1, %v5919_v3  ;;  %vm602_vm12 = vmand %vm538_vm8, %vm570_vm9  ;;  %vm572_vm7 = vcmp.lt.s32.totalorder %v6327_v27, 15  ;;  %vm268_vm8 = vcmp.ge.s32.totalorder %v6050_v19, 1  ;;  %vm300_vm9 = vcmp.lt.s32.totalorder %v6050_v19, 17  ;;  %v854_v19 = vld [vmem:[%s6155_s22 + $0x99] sm:$0xff]  ;;  %v863_v57 = vld [vmem:[%s6155_s22 + $0xe1] sm:$0xff] }
  0x31   : > { %vm330_vm14 = vmand %vm266_vm10, %vm298_vm11  ;;  %v634_v28 = vsel %vm602_vm12, 1, %v5919_v3  ;;  %vm541_vm12 = vcmp.ge.s32.totalorder %v6341_v13, 4294967295 }
  0x32   : > { %691 = vperm.xlu1 %5907, %v626_v41   ;;  %5201 = vmatmul.mubr.msk.f32.gmra.mrb[8].mxu1 %vm869_vm1, %v2370_v62  ;;  %v362_v30 = vsel %vm330_vm14, 1, %v5919_v3  ;;  %vm603_vm4 = vmand %vm539_vm15, %vm571_vm0  ;;  %vm573_vm14 = vcmp.lt.s32.totalorder %v6341_v13, 15  ;;  %vm269_vm15 = vcmp.ge.s32.totalorder %v6044_v17, 1  ;;  %vm301_vm0 = vcmp.lt.s32.totalorder %v6044_v17, 17  ;;  %v856_v17 = vld [vmem:[%s6155_s22 + $0xa9] sm:$0xff] }
  0x33   : > { %387 = vperm.xlu0 %5906, %v354_v43   ;;  %5401 = vmatmul.mubr.msk.f32.gmra.mrb[8].mxu0 %vm869_vm1, %v2372_v5  ;;  %vm331_vm5 = vmand %vm267_vm2, %vm299_vm3  ;;  %v635_v33 = vsel %vm603_vm4, 1, %v5919_v3  ;;  %vm542_vm4 = vcmp.ge.s32.totalorder %v6361_v38, 4294967295  ;;  %v6378_v43 = vld [vmem:[%s7824_s3 + $0xe8] sm:$0xff] }
  0x34   : > { %5203 = vmatprep.mubr.msk.f32.mxu1 %vm869_vm1, %v2371_v0  ;;  %5403 = vmatprep.mubr.msk.f32.mxu0 %vm869_vm1, %v2373_v8  ;;  %v363_v35 = vsel %vm331_vm5, 1, %v5919_v3  ;;  %vm604_vm10 = vmand %vm540_vm6, %vm572_vm7  ;;  %vm574_vm5 = vcmp.lt.s32.totalorder %v6361_v38, 15  ;;  %vm270_vm6 = vcmp.ge.s32.totalorder %v6069_v24, 1  ;;  %vm302_vm7 = vcmp.lt.s32.totalorder %v6069_v24, 17  ;;  %v858_v24 = vld [vmem:[%s6155_s22 + $0xb9] sm:$0xff] }
  0x35   : > { %vm332_vm11 = vmand %vm268_vm8, %vm300_vm9  ;;  %v636_v41 = vsel %vm604_vm10, 1, %v5919_v3  ;;  %vm543_vm10 = vcmp.ge.s32.totalorder %v6378_v43, 4294967295 }
  0x36   : > { %694 = vperm.xlu1 %5907, %v627_v49   ;;  %5204 = vmatmul.mubr.msk.f32.gmra.mrb[10].mxu1 %vm869_vm1, %v2372_v5  ;;  %v364_v42 = vsel %vm332_vm11, 1, %v5919_v3  ;;  %vm605_vm2 = vmand %vm541_vm12, %vm573_vm14  ;;  %vm575_vm11 = vcmp.lt.s32.totalorder %v6378_v43, 15  ;;  %vm271_vm12 = vcmp.ge.s32.totalorder %v6060_v21, 1  ;;  %vm303_vm14 = vcmp.lt.s32.totalorder %v6060_v21, 17  ;;  %v859_v49 = vld [vmem:[%s6155_s22 + $0xc1] sm:$0xff]  ;;  %v860_v21 = vld [vmem:[%s6155_s22 + $0xc9] sm:$0xff] }
  0x37   : > { %390 = vperm.xlu0 %5906, %v355_v50   ;;  %5404 = vmatmul.mubr.msk.f32.gmra.mrb[10].mxu0 %vm869_vm1, %v2374_v11  ;;  %vm333_vm3 = vmand %vm269_vm15, %vm301_vm0  ;;  %v637_v45 = vsel %vm605_vm2, 1, %v5919_v3  ;;  %vm544_vm2 = vcmp.ge.s32.totalorder %v6393_v48, 4294967295 }
  0x38   : > { %5206 = vmatprep.mubr.msk.f32.mxu1 %vm869_vm1, %v2373_v8  ;;  %5406 = vmatprep.mubr.msk.f32.mxu0 %vm869_vm1, %v2375_v16  ;;  %v365_v46 = vsel %vm333_vm3, 1, %v5919_v3  ;;  %vm606_vm8 = vmand %vm542_vm4, %vm574_vm5  ;;  %vm576_vm3 = vcmp.lt.s32.totalorder %v6393_v48, 15  ;;  %vm272_vm4 = vcmp.ge.s32.totalorder %v6116_v32, 1  ;;  %vm304_vm5 = vcmp.lt.s32.totalorder %v6116_v32, 17  ;;  %v862_v32 = vld [vmem:[%s6155_s22 + $0xd9] sm:$0xff] }
  0x39   : > { %vm334_vm9 = vmand %vm270_vm6, %vm302_vm7  ;;  %v638_v50 = vsel %vm606_vm8, 1, %v5919_v3  ;;  %vm545_vm8 = vcmp.ge.s32.totalorder %v6408_v52, 4294967295 }
  0x3a   : > { %697 = vperm.xlu1 %5907, %v628_v55   ;;  %5207 = vmatmul.mubr.msk.f32.gmra.mrb[12].mxu1 %vm869_vm1, %v2374_v11  ;;  %v366_v51 = vsel %vm334_vm9, 1, %v5919_v3  ;;  %vm607_vm15 = vmand %vm543_vm10, %vm575_vm11  ;;  %vm577_vm9 = vcmp.lt.s32.totalorder %v6408_v52, 15  ;;  %vm273_vm10 = vcmp.ge.s32.totalorder %v6101_v29, 1  ;;  %vm305_vm11 = vcmp.lt.s32.totalorder %v6101_v29, 17  ;;  %v865_v29 = vld [vmem:[%s6155_s22 + $0xf1] sm:$0xff] }
  0x3b   : > { %393 = vperm.xlu0 %5906, %v356_v56   ;;  %5407 = vmatmul.mubr.msk.f32.gmra.mrb[12].mxu0 %vm869_vm1, %v2376_v9  ;;  %vm335_vm0 = vmand %vm271_vm12, %vm303_vm14  ;;  %v639_v55 = vsel %vm607_vm15, 1, %v5919_v3  ;;  %vm275_vm15 = vcmp.ge.s32.totalorder %v6148_v37, 1 }
  0x3c   : > { %5209 = vmatprep.mubr.msk.f32.mxu1 %vm869_vm1, %v2375_v16  ;;  %5409 = vmatprep.mubr.msk.f32.mxu0 %vm869_vm1, %v2377_v23  ;;  %v367_v56 = vsel %vm335_vm0, 1, %v5919_v3  ;;  %vm608_vm6 = vmand %vm544_vm2, %vm576_vm3  ;;  %vm307_vm0 = vcmp.lt.s32.totalorder %v6148_v37, 17  ;;  %vm274_vm2 = vcmp.ge.s32.totalorder %v6136_v34, 1  ;;  %vm306_vm3 = vcmp.lt.s32.totalorder %v6136_v34, 17  ;;  %v866_v37 = vld [vmem:[%s6155_s22 + $0xf9] sm:$0xff] }
  0x3d   : > { %vm336_vm7 = vmand %vm272_vm4, %vm304_vm5  ;;  %v640_v59 = vsel %vm608_vm6, 1, %v5919_v3  ;;  %vm277_vm6 = vcmp.ge.s32.totalorder %v6179_v47, 1  ;;  %v1521_v16 = vld [vmem:[%s6155_s22 + $0x12] sm:$0xff] }
  0x3e   : > { %700 = vperm.xlu1 %5907, %v629_v60   ;;  %5210 = vmatmul.mubr.msk.f32.gmra.mrb[14].mxu1 %vm869_vm1, %v2376_v9  ;;  %v368_v60 = vsel %vm336_vm7, 1, %v5919_v3  ;;  %vm609_vm12 = vmand %vm545_vm8, %vm577_vm9  ;;  %vm309_vm7 = vcmp.lt.s32.totalorder %v6179_v47, 17  ;;  %vm276_vm8 = vcmp.ge.s32.totalorder %v6164_v40, 1  ;;  %vm308_vm9 = vcmp.lt.s32.totalorder %v6164_v40, 17  ;;  %v2755_v9 = vld [vmem:[%s6155_s22 + $0x22] sm:$0xff] }
  0x3f   : > { %396 = vperm.xlu0 %5906, %v357_v61   ;;  %5410 = vmatmul.mubr.msk.f32.gmra.mrb[14].mxu0 %vm869_vm1, %v2378_v15  ;;  %vm337_vm14 = vmand %vm273_vm10, %vm305_vm11  ;;  %v864_v61 = vld [vmem:[%s6155_s22 + $0xe9] sm:$0xff]  ;;  %v641_v62 = vsel %vm609_vm12, 1, %v5919_v3  ;;  %vm279_vm12 = vcmp.ge.s32.totalorder %v6229_v58, 1 }
  0x40   : > { %5212 = vmatprep.mubr.msk.f32.mxu1 %vm869_vm1, %v2377_v23  ;;  %v369_v0 = vsel %vm337_vm14, 1, %v5919_v3  ;;  %vm339_vm4 = vmand %vm275_vm15, %vm307_vm0  ;;  %vm311_vm14 = vcmp.lt.s32.totalorder %v6229_v58, 17  ;;  %vm278_vm15 = vcmp.ge.s32.totalorder %v6204_v53, 1  ;;  %vm310_vm0 = vcmp.lt.s32.totalorder %v6204_v53, 17 }
  0x41   : > { %vm338_vm5 = vmand %vm274_vm2, %vm306_vm3  ;;  %v371_v34 = vsel %vm339_vm4, 1, %v5919_v3  ;;  %vm281_vm4 = vcmp.ge.s32.totalorder %v6272_v7, 1 }
  0x42   : > { %703 = vperm.xlu1 %5907, %v630_v1   ;;  %5213 = vmatmul.mubr.msk.f32.gmra.mrb[16].mxu1 %vm869_vm1, %v2378_v15  ;;  %v370_v1 = vsel %vm338_vm5, 1, %v5919_v3  ;;  %vm341_vm10 = vmand %vm277_vm6, %vm309_vm7  ;;  %vm313_vm5 = vcmp.lt.s32.totalorder %v6272_v7, 17  ;;  %vm280_vm6 = vcmp.ge.s32.totalorder %v6246_v63, 1  ;;  %vm312_vm7 = vcmp.lt.s32.totalorder %v6246_v63, 17  ;;  %v1522_v15 = vld [vmem:[%s6155_s22 + $0x1a] sm:$0xff] }
  0x43   : > { %399 = vperm.xlu0 %5906, %v358_v4   ;;  %5215 = vmatprep.mubr.msk.f32.mxu1 %vm869_vm1, %v853_v31  ;;  %vm340_vm11 = vmand %vm276_vm8, %vm308_vm9  ;;  %v373_v40 = vsel %vm341_vm10, 1, %v5919_v3  ;;  %vm283_vm10 = vcmp.ge.s32.totalorder %v6310_v22, 1 }
  0x44   : > { %v372_v47 = vsel %vm340_vm11, 1, %v5919_v3  ;;  %vm343_vm2 = vmand %vm279_vm12, %vm311_vm14  ;;  %vm315_vm11 = vcmp.lt.s32.totalorder %v6310_v22, 17  ;;  %vm282_vm12 = vcmp.ge.s32.totalorder %v6293_v14, 1  ;;  %vm314_vm14 = vcmp.lt.s32.totalorder %v6293_v14, 17 }
  0x45   : > { %vm342_vm3 = vmand %vm278_vm15, %vm310_vm0  ;;  %v375_v58 = vsel %vm343_vm2, 1, %v5919_v3  ;;  %vm285_vm2 = vcmp.ge.s32.totalorder %v6341_v13, 1 }
  0x46   : > { %706 = vperm.xlu1 %5907, %v631_v10   ;;  %5216 = vmatmul.mubr.msk.f32.gmra.mrb[18].mxu1 %vm869_vm1, %v854_v19  ;;  %v374_v53 = vsel %vm342_vm3, 1, %v5919_v3  ;;  %vm345_vm8 = vmand %vm281_vm4, %vm313_vm5  ;;  %vm317_vm3 = vcmp.lt.s32.totalorder %v6341_v13, 17  ;;  %vm284_vm4 = vcmp.ge.s32.totalorder %v6327_v27, 1  ;;  %vm316_vm5 = vcmp.lt.s32.totalorder %v6327_v27, 17  ;;  %v3990_v27 = vld [vmem:[%s6155_s22 + $0x3a] sm:$0xff] }
  0x47   : > { %402 = vperm.xlu0 %5906, %v359_v12   ;;  %5218 = vmatprep.mubr.msk.f32.mxu1 %vm869_vm1, %v855_v39  ;;  %vm344_vm9 = vmand %vm280_vm6, %vm312_vm7  ;;  %v377_v4 = vsel %vm345_vm8, 1, %v5919_v3  ;;  %vm287_vm8 = vcmp.ge.s32.totalorder %v6378_v43, 1  ;;  %v6522_v39 = vld [vmem:[%s7822_s1 + $0x1c] sm:$0xf] }
  0x48   : > { %v376_v63 = vsel %vm344_vm9, 1, %v5919_v3  ;;  %vm347_vm15 = vmand %vm283_vm10, %vm315_vm11  ;;  %vm319_vm9 = vcmp.lt.s32.totalorder %v6378_v43, 17  ;;  %vm286_vm10 = vcmp.ge.s32.totalorder %v6361_v38, 1  ;;  %vm318_vm11 = vcmp.lt.s32.totalorder %v6361_v38, 17  ;;  %v3992_v38 = vld [vmem:[%s6155_s22 + $0x4a] sm:$0xff] }
  0x49   : > { %vm346_vm0 = vmand %vm282_vm12, %vm314_vm14  ;;  %v379_v6 = vsel %vm347_vm15, 1, %v5919_v3  ;;  %vm289_vm15 = vcmp.ge.s32.totalorder %v6408_v52, 1 }
  0x4a   : > { %709 = vperm.xlu1 %5907, %v632_v18   ;;  %5219 = vmatmul.mubr.msk.f32.gmra.mrb[20].mxu1 %vm869_vm1, %v856_v17  ;;  %v378_v5 = vsel %vm346_vm0, 1, %v5919_v3  ;;  %vm349_vm6 = vmand %vm285_vm2, %vm317_vm3  ;;  %vm321_vm0 = vcmp.lt.s32.totalorder %v6408_v52, 17  ;;  %vm288_vm2 = vcmp.ge.s32.totalorder %v6393_v48, 1  ;;  %vm320_vm3 = vcmp.lt.s32.totalorder %v6393_v48, 17  ;;  %v3989_v18 = vld [vmem:[%s6155_s22 + $0x32] sm:$0xff]  ;;  %v3991_v17 = vld [vmem:[%s6155_s22 + $0x42] sm:$0xff] }
  0x4b   : > { %405 = vperm.xlu0 %5906, %v360_v20   ;;  %5221 = vmatprep.mubr.msk.f32.mxu1 %vm869_vm1, %v857_v44  ;;  %vm348_vm7 = vmand %vm284_vm4, %vm316_vm5  ;;  %v381_v7 = vsel %vm349_vm6, 1, %v5919_v3 }
  0x4c   : > { %v380_v8 = vsel %vm348_vm7, 1, %v5919_v3  ;;  %vm351_vm12 = vmand %vm287_vm8, %vm319_vm9 }
  0x4d   : > { %vm350_vm14 = vmand %vm286_vm10, %vm318_vm11  ;;  %v383_v10 = vsel %vm351_vm12, 1, %v5919_v3 }
  0x4e   : > { %712 = vperm.xlu1 %5907, %v633_v25   ;;  %5222 = vmatmul.mubr.msk.f32.gmra.mrb[22].mxu1 %vm869_vm1, %v858_v24  ;;  %v382_v12 = vsel %vm350_vm14, 1, %v5919_v3  ;;  %vm353_vm4 = vmand %vm289_vm15, %vm321_vm0 }
  0x4f   : > { %408 = vperm.xlu0 %5906, %v361_v26   ;;  %5224 = vmatprep.mubr.msk.f32.mxu1 %vm869_vm1, %v859_v49  ;;  %vm352_vm5 = vmand %vm288_vm2, %vm320_vm3  ;;  %v385_v11 = vsel %vm353_vm4, 1, %v5919_v3 }
  0x50   : > { %v384_v14 = vsel %vm352_vm5, 1, %v5919_v3 }
  0x52   : > { %715 = vperm.xlu1 %5907, %v634_v28   ;;  %5225 = vmatmul.mubr.msk.f32.gmra.mrb[24].mxu1 %vm869_vm1, %v860_v21 }
  0x53   : > { %411 = vperm.xlu0 %5906, %v362_v30   ;;  %5227 = vmatprep.mubr.msk.f32.mxu1 %vm869_vm1, %v861_v54  ;;  %v2756_v30 = vld [vmem:[%s6155_s22 + $0x2a] sm:$0xff] }
  0x56   : > { %718 = vperm.xlu1 %5907, %v635_v33   ;;  %5228 = vmatmul.mubr.msk.f32.gmra.mrb[26].mxu1 %vm869_vm1, %v862_v32 }
  0x57   : > { %414 = vperm.xlu0 %5906, %v363_v35   ;;  %5230 = vmatprep.mubr.msk.f32.mxu1 %vm869_vm1, %v863_v57 }
  0x5a   : > { %721 = vperm.xlu1 %5907, %v636_v41   ;;  %5231 = vmatmul.mubr.msk.f32.gmra.mrb[28].mxu1 %vm869_vm1, %v864_v61  ;;  %v3995_v61 = vld [vmem:[%s6155_s22 + $0x62] sm:$0xff] }
  0x5b   : > { %417 = vperm.xlu0 %5906, %v364_v42   ;;  %5233 = vmatprep.mubr.msk.f32.mxu1 %vm869_vm1, %v865_v29 }
  0x5e   : > { %724 = vperm.xlu1 %5907, %v637_v45   ;;  %5234 = vmatmul.mubr.msk.f32.gmra.mrb[30].mxu1 %vm869_vm1, %v866_v37 }
  0x5f   : > { %420 = vperm.xlu0 %5906, %v365_v46  }
  0x62   : > { %727 = vperm.xlu1 %5907, %v638_v50   ;;  %v3994_v50 = vld [vmem:[%s6155_s22 + $0x5a] sm:$0xff] }
  0x63   : > { %423 = vperm.xlu0 %5906, %v366_v51   ;;  %v3993_v51 = vld [vmem:[%s6155_s22 + $0x52] sm:$0xff] }
  0x66   : > { %730 = vperm.xlu1 %5907, %v639_v55  }
  0x67   : > { %426 = vperm.xlu0 %5906, %v367_v56  }
  0x6a   : > { %733 = vperm.xlu1 %5907, %v640_v59   ;;  %v3996_v59 = vld [vmem:[%s6155_s22 + $0x6a] sm:$0xff] }
  0x6b   : > { %429 = vperm.xlu0 %5906, %v368_v60  }
  0x6e   : > { %736 = vperm.xlu1 %5907, %v641_v62  }
  0x6f   : > { %432 = vperm.xlu0 %5906, %v369_v0  }
  0x72   : > { %438 = vperm.xlu1 %5907, %v371_v34  }
  0x73   : > { %435 = vperm.xlu0 %5906, %v370_v1  }
  0x76   : > { %444 = vperm.xlu1 %5907, %v373_v40  }
  0x77   : > { %441 = vperm.xlu0 %5906, %v372_v47   ;;  %v3998_v47 = vld [vmem:[%s6155_s22 + $0x7a] sm:$0xff] }
  0x7a   : > { %450 = vperm.xlu1 %5907, %v375_v58  }
  0x7b   : > { %447 = vperm.xlu0 %5906, %v374_v53   ;;  %v3997_v53 = vld [vmem:[%s6155_s22 + $0x72] sm:$0xff] }
  0x7e   : > { %456 = vperm.xlu1 %5907, %v377_v4  }
  0x7f   : > { %453 = vperm.xlu0 %5906, %v376_v63  }
  0x82   : > { %462 = vperm.xlu1 %5907, %v379_v6  }
  0x83   : > { %459 = vperm.xlu0 %5906, %v378_v5  }
  0x86   : > { %468 = vperm.xlu1 %5907, %v381_v7  }
  0x87   : > { %465 = vperm.xlu0 %5906, %v380_v8  }
  0x8a   : > { %474 = vperm.xlu1 %5907, %v383_v10  }
  0x8b   : > { %471 = vperm.xlu0 %5906, %v382_v12   ;;  %v4000_v12 = vld [vmem:[%s6155_s22 + $0x8a] sm:$0xff] }
  0x8e   : > { %480 = vperm.xlu1 %5907, %v385_v11  }
  0x8f   : > { %477 = vperm.xlu0 %5906, %v384_v14   ;;  %v3999_v14 = vld [vmem:[%s6155_s22 + $0x82] sm:$0xff] }
  0x91   : > { %v650_v20 = vpop.permute.xlu1 %649 }
  0x92   : > { %vm740_vm6 = vcmp.eq.s32.totalorder %v650_v20, 1  ;;  %v6484_v22 = vpop.permute.xlu0 %643 }
  0x93   : > { %v6487_v23 = vsel %vm740_vm6, %v1521_v16, 0.0  ;;  %v6490_v25 = vsel %vm740_vm6, %v3989_v18, 0.0  ;;  %vm7828_vm7 = vcmp.eq.s32.totalorder %v6484_v22, 1  ;;  %v2787_v41 = vsel %vm740_vm6, %v2755_v9, 0.0 }
  0x94   : > { %7846 = vst [vmem:[#allocation3_spill] sm:$0xff] %v6490_v25  ;;  %v2785_v3 = vsel %vm7828_vm7, %v1521_v16, 0.0  ;;  %v6497_v26 = vsel %vm7828_vm7, %v2755_v9, 0.0  ;;  %v6831_v25 = vld [vmem:[%s6155_s22 + $0x58] sm:$0xff] }
  0x95   : > { %7847 = vst [vmem:[#allocation4_spill] sm:$0xff] %v6497_v26  ;;  %5438 = vmatprep.mubr.msk.f32.mxu0 %vm869_vm1, %v2785_v3  ;;  %v653_v28 = vpop.permute.xlu1 %652 }
  0x96   : > { %vm741_vm8 = vcmp.eq.s32.totalorder %v653_v28, 1  ;;  %v6503_v13 = vpop.permute.xlu0 %646  ;;  %v6604_v28 = vld [vmem:[%s6155_s22 + $0x9a] sm:$0xff] }
  0x97   : > { %v6506_v31 = vsel %vm741_vm8, %v1522_v15, 0.0  ;;  %v6509_v33 = vsel %vm741_vm8, %v3990_v27, 0.0  ;;  %vm7827_vm9 = vcmp.eq.s32.totalorder %v6503_v13, 1  ;;  %v2788_v46 = vsel %vm741_vm8, %v2756_v30, 0.0 }
  0x98   : > { %7848 = vst [vmem:[#allocation5_spill] sm:$0xff] %v6509_v33  ;;  %v2786_v35 = vsel %vm7827_vm9, %v1522_v15, 0.0  ;;  %v6516_v19 = vsel %vm7827_vm9, %v2756_v30, 0.0 }
  0x99   : > { %7849 = vst [vmem:[#allocation6_spill] sm:$0xff] %v6516_v19  ;;  %5439 = vmatmul.mubr.msk.f32.vlgmr.msra.gmra.mrb[0].mxu0 %vm869_vm1, %v2786_v35  ;;  %v659_v42 = vpop.permute.xlu1 %658  ;;  %v4001_v35 = vld [vmem:[%s6155_s22 + $0x92] sm:$0xff] }
  0x9a   : > { %vm743_vm10 = vcmp.eq.s32.totalorder %v659_v42, 1  ;;  %v656_v43 = vpop.permute.xlu0 %655  ;;  %5441 = vmatprep.mubr.msk.f32.mxu0 %vm869_vm1, %v2787_v41  ;;  %5487 = vmatpush3.msk.msra.mxu0 %vm966_vm13, %v6253_v2 }
  0x9b   : > { %v6531_v44 = vsel %vm743_vm10, %v2756_v30, 0.0  ;;  %v6534_v45 = vsel %vm743_vm10, %v3992_v38, 0.0  ;;  %vm742_vm11 = vcmp.eq.s32.totalorder %v656_v43, 1  ;;  %5536 = vmatprep.subr.msk.mxu0 %vm966_vm13, %v6522_v39  ;;  %v2790_v55 = vsel %vm743_vm10, %v3990_v27, 0.0 }
  0x9c   : > { %7850 = vst [vmem:[#allocation7_spill] sm:$0xff] %v6534_v45  ;;  %v6539_v24 = vsel %vm742_vm11, %v2755_v9, 0.0  ;;  %v2789_v48 = vsel %vm742_vm11, %v3989_v18, 0.0  ;;  %v6541_v49 = vsel %vm742_vm11, %v3991_v17, 0.0 }
  0x9d   : > { %7851 = vst [vmem:[#allocation8_spill] sm:$0xff] %v6541_v49  ;;  %5442 = vmatmul.mubr.msk.f32.gmra.mrb[2].mxu0 %vm869_vm1, %v2788_v46  ;;  %v665_v2 = vpop.permute.xlu1 %664 }
  0x9e   : > { %vm745_vm12 = vcmp.eq.s32.totalorder %v665_v2, 1  ;;  %v662_v21 = vpop.permute.xlu0 %661  ;;  %5444 = vmatprep.mubr.msk.f32.mxu0 %vm869_vm1, %v2789_v48 }
  0x9f   : > { %v6548_v52 = vsel %vm745_vm12, %v3990_v27, 0.0  ;;  %v6551_v54 = vsel %vm745_vm12, %v3994_v50, 0.0  ;;  %vm744_vm14 = vcmp.eq.s32.totalorder %v662_v21, 1  ;;  %v2792_v37 = vsel %vm745_vm12, %v3992_v38, 0.0  ;;  %v1941_v21 = vld [vmem:[%s6155_s22 + $0x10] sm:$0xff] }
  0xa0   : > { %7852 = vst [vmem:[#allocation9_spill] sm:$0xff] %v6551_v54  ;;  %v6554_v56 = vsel %vm744_vm14, %v3989_v18, 0.0  ;;  %v2791_v32 = vsel %vm744_vm14, %v3991_v17, 0.0  ;;  %v6556_v57 = vsel %vm744_vm14, %v3993_v51, 0.0 }
  0xa1   : > { %7853 = vst [vmem:[#allocation10_spill] sm:$0xff] %v6556_v57  ;;  %5445 = vmatmul.mubr.msk.f32.gmra.mrb[4].mxu0 %vm869_vm1, %v2790_v55  ;;  %v671_v60 = vpop.permute.xlu1 %670  ;;  %v6810_v57 = vld [vmem:[%s6155_s22 + $0x50] sm:$0xff] }
  0xa2   : > { %vm747_vm15 = vcmp.eq.s32.totalorder %v671_v60, 1  ;;  %v668_v29 = vpop.permute.xlu0 %667  ;;  %5447 = vmatprep.mubr.msk.f32.mxu0 %vm869_vm1, %v2791_v32 }
  0xa3   : > { %v6563_v62 = vsel %vm747_vm15, %v3992_v38, 0.0  ;;  %v6566_v0 = vsel %vm747_vm15, %v3996_v59, 0.0  ;;  %vm746_vm0 = vcmp.eq.s32.totalorder %v668_v29, 1  ;;  %v2794_v5 = vsel %vm747_vm15, %v3994_v50, 0.0 }
  0xa4   : > { %7854 = vst [vmem:[#allocation11_spill] sm:$0xff] %v6566_v0  ;;  %v6569_v34 = vsel %vm746_vm0, %v3991_v17, 0.0  ;;  %v2793_v1 = vsel %vm746_vm0, %v3993_v51, 0.0  ;;  %v6571_v40 = vsel %vm746_vm0, %v3995_v61, 0.0 }
  0xa5   : > { %7855 = vst [vmem:[#allocation12_spill] sm:$0xff] %v6571_v40  ;;  %5448 = vmatmul.mubr.msk.f32.gmra.mrb[6].mxu0 %vm869_vm1, %v2792_v37  ;;  %v677_v58 = vpop.permute.xlu1 %676 }
  0xa6   : > { %vm749_vm2 = vcmp.eq.s32.totalorder %v677_v58, 1  ;;  %v674_v4 = vpop.permute.xlu0 %673  ;;  %5450 = vmatprep.mubr.msk.f32.mxu0 %vm869_vm1, %v2793_v1  ;;  %v6644_v1 = vld [vmem:[%s6155_s22 + $0xaa] sm:$0xff] }
  0xa7   : > { %v6578_v63 = vsel %vm749_vm2, %v3994_v50, 0.0  ;;  %v6581_v6 = vsel %vm749_vm2, %v3998_v47, 0.0  ;;  %vm748_vm3 = vcmp.eq.s32.totalorder %v674_v4, 1  ;;  %v2796_v9 = vsel %vm749_vm2, %v3996_v59, 0.0  ;;  %v6622_v50 = vld [vmem:[%s6155_s22 + $0xa2] sm:$0xff] }
  0xa8   : > { %7856 = vst [vmem:[#allocation13_spill] sm:$0xff] %v6581_v6  ;;  %v6584_v7 = vsel %vm748_vm3, %v3993_v51, 0.0  ;;  %v2795_v8 = vsel %vm748_vm3, %v3995_v61, 0.0  ;;  %v6586_v10 = vsel %vm748_vm3, %v3997_v53, 0.0  ;;  %v770_v51 = vld [vmem:[%s6155_s22] sm:$0xff]  ;;  %v771_v58 = vld [vmem:[%s6155_s22 + $0x8] sm:$0xff] }
  0xa9   : > { %7857 = vst [vmem:[#allocation14_spill] sm:$0xff] %v6586_v10  ;;  %5451 = vmatmul.mubr.msk.f32.gmra.mrb[8].mxu0 %vm869_vm1, %v2794_v5  ;;  %v683_v11 = vpop.permute.xlu1 %682  ;;  %v6789_v10 = vld [vmem:[%s6155_s22 + $0x48] sm:$0xff] }
  0xaa   : > { %vm751_vm4 = vcmp.eq.s32.totalorder %v683_v11, 1  ;;  %v680_v16 = vpop.permute.xlu0 %679  ;;  %5453 = vmatprep.mubr.msk.f32.mxu0 %vm869_vm1, %v2795_v8 }
  0xab   : > { %v6593_v18 = vsel %vm751_vm4, %v3996_v59, 0.0  ;;  %v6596_v20 = vsel %vm751_vm4, %v4000_v12, 0.0  ;;  %vm750_vm5 = vcmp.eq.s32.totalorder %v680_v16, 1  ;;  %v2798_v17 = vsel %vm751_vm4, %v3998_v47, 0.0 }
  0xac   : > { %7858 = vst [vmem:[#allocation15_spill] sm:$0xff] %v6596_v20  ;;  %v6599_v3 = vsel %vm750_vm5, %v3995_v61, 0.0  ;;  %v2797_v15 = vsel %vm750_vm5, %v3997_v53, 0.0  ;;  %v6601_v27 = vsel %vm750_vm5, %v3999_v14, 0.0 }
  0xad   : > { %7859 = vst [vmem:[#allocation16_spill] sm:$0xff] %v6601_v27  ;;  %5454 = vmatmul.mubr.msk.f32.gmra.mrb[10].mxu0 %vm869_vm1, %v2796_v9  ;;  %v689_v30 = vpop.permute.xlu1 %688  ;;  %v4005_v9 = vld [vmem:[%s6155_s22 + $0xb2] sm:$0xff] }
  0xae   : > { %vm753_vm6 = vcmp.eq.s32.totalorder %v689_v30, 1  ;;  %v686_v38 = vpop.permute.xlu0 %685  ;;  %5456 = vmatprep.mubr.msk.f32.mxu0 %vm869_vm1, %v2797_v15 }
  0xaf   : > { %v6610_v41 = vsel %vm753_vm6, %v3998_v47, 0.0  ;;  %v6614_v42 = vsel %vm753_vm6, %v6604_v28, 0.0  ;;  %vm752_vm8 = vcmp.eq.s32.totalorder %v686_v38, 1  ;;  %v2800_v61 = vsel %vm753_vm6, %v4000_v12, 0.0  ;;  %v6679_v38 = vld [vmem:[%s6155_s22 + $0x20] sm:$0xff] }
  0xb0   : > { %7860 = vst [vmem:[#allocation17_spill] sm:$0xff] %v6614_v42  ;;  %v6617_v43 = vsel %vm752_vm8, %v3997_v53, 0.0  ;;  %v2799_v46 = vsel %vm752_vm8, %v3999_v14, 0.0  ;;  %v6619_v48 = vsel %vm752_vm8, %v4001_v35, 0.0  ;;  %v1942_v53 = vld [vmem:[%s6155_s22 + $0x18] sm:$0xff] }
  0xb1   : > { %7861 = vst [vmem:[#allocation18_spill] sm:$0xff] %v6619_v48  ;;  %5457 = vmatmul.mubr.msk.f32.gmra.mrb[12].mxu0 %vm869_vm1, %v2798_v17  ;;  %v692_v2 = vpop.permute.xlu1 %691  ;;  %v6768_v48 = vld [vmem:[%s6155_s22 + $0x40] sm:$0xff] }
  0xb2   : > { %vm754_vm10 = vcmp.eq.s32.totalorder %v692_v2, 1  ;;  %v6627_v55 = vpop.permute.xlu0 %387  ;;  %5459 = vmatprep.mubr.msk.f32.mxu0 %vm869_vm1, %v2799_v46 }
  0xb3   : > { %v6630_v32 = vsel %vm754_vm10, %v3999_v14, 0.0  ;;  %v2801_v59 = vsel %vm754_vm10, %v4001_v35, 0.0  ;;  %v6633_v60 = vsel %vm754_vm10, %v6622_v50, 0.0  ;;  %vm482_vm11 = vcmp.eq.s32.totalorder %v6627_v55, 1 }
  0xb4   : > { %7862 = vst [vmem:[#allocation19_spill] sm:$0xff] %v6633_v60  ;;  %v802_v29 = vsel %vm482_vm11, %v770_v51, 0.0  ;;  %v6641_v37 = vsel %vm482_vm11, %v1941_v21, 0.0 }
  0xb5   : > { %7863 = vst [vmem:[#allocation20_spill] sm:$0xff] %v6641_v37  ;;  %5238 = vmatprep.mubr.msk.f32.mxu1 %vm869_vm1, %v802_v29  ;;  %5460 = vmatmul.mubr.msk.f32.gmra.mrb[14].mxu0 %vm869_vm1, %v2800_v61  ;;  %v695_v47 = vpop.permute.xlu1 %694  ;;  %v6702_v29 = vld [vmem:[%s6155_s22 + $0x28] sm:$0xff] }
  0xb6   : > { %vm755_vm12 = vcmp.eq.s32.totalorder %v695_v47, 1  ;;  %v6650_v4 = vpop.permute.xlu0 %390  ;;  %5462 = vmatprep.mubr.msk.f32.mxu0 %vm869_vm1, %v2801_v59 }
  0xb7   : > { %v6653_v5 = vsel %vm755_vm12, %v4000_v12, 0.0  ;;  %v2802_v8 = vsel %vm755_vm12, %v6604_v28, 0.0  ;;  %v6657_v11 = vsel %vm755_vm12, %v6644_v1, 0.0  ;;  %vm483_vm14 = vcmp.eq.s32.totalorder %v6650_v4, 1  ;;  %v6670_v12 = vld [vmem:[%s7822_s1 + $0xc] sm:$0xf] }
  0xb8   : > { %7864 = vst [vmem:[#allocation21_spill] sm:$0xff] %v6657_v11  ;;  %v803_v14 = vsel %vm483_vm14, %v771_v58, 0.0  ;;  %v6664_v16 = vsel %vm483_vm14, %v1942_v53, 0.0 }
  0xb9   : > { %7865 = vst [vmem:[#allocation22_spill] sm:$0xff] %v6664_v16  ;;  %5239 = vmatmul.mubr.msk.f32.vlgmr.msra.gmra.mrb[0].mxu1 %vm869_vm1, %v803_v14  ;;  %5463 = vmatmul.mubr.msk.f32.gmra.mrb[16].mxu0 %vm869_vm1, %v2802_v8  ;;  %v698_v15 = vpop.permute.xlu1 %697 }
  0xba   : > { %vm756_vm15 = vcmp.eq.s32.totalorder %v698_v15, 1  ;;  %v6674_v30 = vpop.permute.xlu0 %393  ;;  %5287 = vmatpush3.msk.msra.mxu1 %vm966_vm13, %v6354_v36  ;;  %v4007_v15 = vld [vmem:[%s6155_s22 + $0xc2] sm:$0xff] }
  0xbb   : > { %v6681_v17 = vsel %vm756_vm15, %v4001_v35, 0.0  ;;  %v2803_v46 = vsel %vm756_vm15, %v6622_v50, 0.0  ;;  %v6684_v2 = vsel %vm756_vm15, %v4005_v9, 0.0  ;;  %vm484_vm0 = vcmp.eq.s32.totalorder %v6674_v30, 1  ;;  %5336 = vmatprep.subr.msk.mxu1 %vm966_vm13, %v6670_v12  ;;  %v4006_v35 = vld [vmem:[%s6155_s22 + $0xba] sm:$0xff] }
  0xbc   : > { %7866 = vst [vmem:[#allocation23_spill] sm:$0xff] %v6684_v2  ;;  %v804_v51 = vsel %vm484_vm0, %v1941_v21, 0.0  ;;  %v6694_v36 = vsel %vm484_vm0, %v6679_v38, 0.0  ;;  %5465 = vmatprep.mubr.msk.f32.mxu0 %vm869_vm1, %v2803_v46  ;;  %v6746_v2 = vld [vmem:[%s6155_s22 + $0x38] sm:$0xff] }
  0xbd   : > { %7867 = vst [vmem:[#allocation24_spill] sm:$0xff] %v6694_v36  ;;  %5241 = vmatprep.mubr.msk.f32.mxu1 %vm869_vm1, %v804_v51  ;;  %v701_v59 = vpop.permute.xlu1 %700  ;;  %v6724_v51 = vld [vmem:[%s6155_s22 + $0x30] sm:$0xff] }
  0xbe   : > { %vm757_vm2 = vcmp.eq.s32.totalorder %v701_v59, 1  ;;  %v6699_v61 = vpop.permute.xlu0 %396 }
  0xbf   : > { %v6705_v21 = vsel %vm757_vm2, %v6604_v28, 0.0  ;;  %v2804_v47 = vsel %vm757_vm2, %v6644_v1, 0.0  ;;  %v6708_v58 = vsel %vm757_vm2, %v4006_v35, 0.0  ;;  %vm485_vm3 = vcmp.eq.s32.totalorder %v6699_v61, 1 }
  0xc0   : > { %7868 = vst [vmem:[#allocation25_spill] sm:$0xff] %v6708_v58  ;;  %v805_v8 = vsel %vm485_vm3, %v1942_v53, 0.0  ;;  %v6716_v14 = vsel %vm485_vm3, %v6702_v29, 0.0  ;;  %5466 = vmatmul.mubr.msk.f32.gmra.mrb[18].mxu0 %vm869_vm1, %v2804_v47 }
  0xc1   : > { %7869 = vst [vmem:[#allocation26_spill] sm:$0xff] %v6716_v14  ;;  %5242 = vmatmul.mubr.msk.f32.gmra.mrb[2].mxu1 %vm869_vm1, %v805_v8  ;;  %v704_v28 = vpop.permute.xlu1 %703 }
  0xc2   : > { %vm758_vm4 = vcmp.eq.s32.totalorder %v704_v28, 1  ;;  %v6721_v46 = vpop.permute.xlu0 %399  ;;  %v4008_v28 = vld [vmem:[%s6155_s22 + $0xca] sm:$0xff] }
  0xc3   : > { %v6727_v53 = vsel %vm758_vm4, %v6622_v50, 0.0  ;;  %v2805_v59 = vsel %vm758_vm4, %v4005_v9, 0.0  ;;  %v6729_v58 = vsel %vm758_vm4, %v4007_v15, 0.0  ;;  %vm486_vm5 = vcmp.eq.s32.totalorder %v6721_v46, 1 }
  0xc4   : > { %7870 = vst [vmem:[#allocation27_spill] sm:$0xff] %v6729_v58  ;;  %v806_v47 = vsel %vm486_vm5, %v6679_v38, 0.0  ;;  %v6738_v8 = vsel %vm486_vm5, %v6724_v51, 0.0  ;;  %5468 = vmatprep.mubr.msk.f32.mxu0 %vm869_vm1, %v2805_v59 }
  0xc5   : > { %7871 = vst [vmem:[#allocation28_spill] sm:$0xff] %v6738_v8  ;;  %5244 = vmatprep.mubr.msk.f32.mxu1 %vm869_vm1, %v806_v47  ;;  %v707_v50 = vpop.permute.xlu1 %706 }
  0xc6   : > { %vm759_vm6 = vcmp.eq.s32.totalorder %v707_v50, 1  ;;  %v6743_v58 = vpop.permute.xlu0 %402  ;;  %v4009_v50 = vld [vmem:[%s6155_s22 + $0xd2] sm:$0xff] }
  0xc7   : > { %v6749_v11 = vsel %vm759_vm6, %v6644_v1, 0.0  ;;  %v2806_v60 = vsel %vm759_vm6, %v4006_v35, 0.0  ;;  %v6751_v42 = vsel %vm759_vm6, %v4008_v28, 0.0  ;;  %vm487_vm8 = vcmp.eq.s32.totalorder %v6743_v58, 1 }
  0xc8   : > { %7872 = vst [vmem:[#allocation29_spill] sm:$0xff] %v6751_v42  ;;  %v807_v59 = vsel %vm487_vm8, %v6702_v29, 0.0  ;;  %v6760_v47 = vsel %vm487_vm8, %v6746_v2, 0.0  ;;  %5469 = vmatmul.mubr.msk.f32.gmra.mrb[20].mxu0 %vm869_vm1, %v2806_v60  ;;  %v3212_v46 = vsel %vm487_vm8, %v6789_v10, 0.0 }
  0xc9   : > { %7873 = vst [vmem:[#allocation30_spill] sm:$0xff] %v6760_v47  ;;  %5245 = vmatmul.mubr.msk.f32.gmra.mrb[4].mxu1 %vm869_vm1, %v807_v59  ;;  %v710_v1 = vpop.permute.xlu1 %709 }
  0xca   : > { %vm760_vm10 = vcmp.eq.s32.totalorder %v710_v1, 1  ;;  %v6765_v42 = vpop.permute.xlu0 %405  ;;  %v4010_v1 = vld [vmem:[%s6155_s22 + $0xda] sm:$0xff] }
  0xcb   : > { %v6770_v20 = vsel %vm760_vm10, %v4005_v9, 0.0  ;;  %v2807_v27 = vsel %vm760_vm10, %v4007_v15, 0.0  ;;  %v6772_v6 = vsel %vm760_vm10, %v4009_v50, 0.0  ;;  %vm488_vm12 = vcmp.eq.s32.totalorder %v6765_v42, 1 }
  0xcc   : > { %7874 = vst [vmem:[#allocation31_spill] sm:$0xff] %v6772_v6  ;;  %v808_v60 = vsel %vm488_vm12, %v6724_v51, 0.0  ;;  %v6781_v59 = vsel %vm488_vm12, %v6768_v48, 0.0  ;;  %5471 = vmatprep.mubr.msk.f32.mxu0 %vm869_vm1, %v2807_v27 }
  0xcd   : > { %7875 = vst [vmem:[#allocation32_spill] sm:$0xff] %v6781_v59  ;;  %5247 = vmatprep.mubr.msk.f32.mxu1 %vm869_vm1, %v808_v60  ;;  %v713_v9 = vpop.permute.xlu1 %712 }
  0xce   : > { %vm761_vm15 = vcmp.eq.s32.totalorder %v713_v9, 1  ;;  %v6786_v6 = vpop.permute.xlu0 %408  ;;  %v4011_v9 = vld [vmem:[%s6155_s22 + $0xe2] sm:$0xff] }
  0xcf   : > { %v6791_v0 = vsel %vm761_vm15, %v4006_v35, 0.0  ;;  %v2808_v40 = vsel %vm761_vm15, %v4008_v28, 0.0  ;;  %v6793_v54 = vsel %vm761_vm15, %v4010_v1, 0.0  ;;  %vm489_vm2 = vcmp.eq.s32.totalorder %v6786_v6, 1 }
  0xd0   : > { %7876 = vst [vmem:[#allocation33_spill] sm:$0xff] %v6791_v0  ;;  %7877 = vst [vmem:[#allocation34_spill] sm:$0xff] %v6793_v54  ;;  %v809_v27 = vsel %vm489_vm2, %v6746_v2, 0.0  ;;  %v6802_v60 = vsel %vm489_vm2, %v6789_v10, 0.0  ;;  %5472 = vmatmul.mubr.msk.f32.gmra.mrb[22].mxu0 %vm869_vm1, %v2808_v40  ;;  %v3214_v42 = vsel %vm489_vm2, %v6831_v25, 0.0 }
  0xd1   : > { %7878 = vst [vmem:[#allocation35_spill] sm:$0xff] %v6802_v60  ;;  %5248 = vmatmul.mubr.msk.f32.gmra.mrb[6].mxu1 %vm869_vm1, %v809_v27  ;;  %v716_v35 = vpop.permute.xlu1 %715 }
  0xd2   : > { %vm762_vm4 = vcmp.eq.s32.totalorder %v716_v35, 1  ;;  %v6807_v54 = vpop.permute.xlu0 %411  ;;  %v4012_v35 = vld [vmem:[%s6155_s22 + $0xea] sm:$0xff] }
  0xd3   : > { %v6812_v45 = vsel %vm762_vm4, %v4007_v15, 0.0  ;;  %v2809_v49 = vsel %vm762_vm4, %v4009_v50, 0.0  ;;  %v6814_v33 = vsel %vm762_vm4, %v4011_v9, 0.0  ;;  %vm490_vm6 = vcmp.eq.s32.totalorder %v6807_v54, 1 }
  0xd4   : > { %7879 = vst [vmem:[#allocation36_spill] sm:$0xff] %v6812_v45  ;;  %7880 = vst [vmem:[#allocation37_spill] sm:$0xff] %v6814_v33  ;;  %v810_v40 = vsel %vm490_vm6, %v6768_v48, 0.0  ;;  %v6823_v27 = vsel %vm490_vm6, %v6810_v57, 0.0  ;;  %5474 = vmatprep.mubr.msk.f32.mxu0 %vm869_vm1, %v2809_v49 }
  0xd5   : > { %7881 = vst [vmem:[#allocation38_spill] sm:$0xff] %v6823_v27  ;;  %5250 = vmatprep.mubr.msk.f32.mxu1 %vm869_vm1, %v810_v40  ;;  %v719_v15 = vpop.permute.xlu1 %718  ;;  %v6852_v27 = vld [vmem:[%s6155_s22 + $0x60] sm:$0xff] }
  0xd6   : > { %vm763_vm10 = vcmp.eq.s32.totalorder %v719_v15, 1  ;;  %v6828_v33 = vpop.permute.xlu0 %414  ;;  %v4013_v15 = vld [vmem:[%s6155_s22 + $0xf2] sm:$0xff] }
  0xd7   : > { %v6833_v19 = vsel %vm763_vm10, %v4008_v28, 0.0  ;;  %v2810_v26 = vsel %vm763_vm10, %v4010_v1, 0.0  ;;  %v6835_v60 = vsel %vm763_vm10, %v4012_v35, 0.0  ;;  %vm491_vm15 = vcmp.eq.s32.totalorder %v6828_v33, 1 }
  0xd8   : > { %7882 = vst [vmem:[#allocation39_spill] sm:$0xff] %v6833_v19  ;;  %7883 = vst [vmem:[#allocation40_spill] sm:$0xff] %v6835_v60  ;;  %v811_v49 = vsel %vm491_vm15, %v6789_v10, 0.0  ;;  %v6844_v40 = vsel %vm491_vm15, %v6831_v25, 0.0  ;;  %5475 = vmatmul.mubr.msk.f32.gmra.mrb[24].mxu0 %vm869_vm1, %v2810_v26 }
  0xd9   : > { %7884 = vst [vmem:[#allocation41_spill] sm:$0xff] %v6844_v40  ;;  %5251 = vmatmul.mubr.msk.f32.gmra.mrb[8].mxu1 %vm869_vm1, %v811_v49  ;;  %v722_v28 = vpop.permute.xlu1 %721  ;;  %v6873_v40 = vld [vmem:[%s6155_s22 + $0x68] sm:$0xff] }
  0xda   : > { %vm764_vm4 = vcmp.eq.s32.totalorder %v722_v28, 1  ;;  %v6849_v60 = vpop.permute.xlu0 %417  ;;  %v4014_v28 = vld [vmem:[%s6155_s22 + $0xfa] sm:$0xff] }
  0xdb   : > { %v6854_v59 = vsel %vm764_vm4, %v4009_v50, 0.0  ;;  %v2811_v47 = vsel %vm764_vm4, %v4011_v9, 0.0  ;;  %v6856_v8 = vsel %vm764_vm4, %v4013_v15, 0.0  ;;  %vm492_vm10 = vcmp.eq.s32.totalorder %v6849_v60, 1 }
  0xdc   : > { %7885 = vst [vmem:[#allocation42_spill] sm:$0xff] %v6854_v59  ;;  %7886 = vst [vmem:[#allocation43_spill] sm:$0xff] %v6856_v8  ;;  %v812_v26 = vsel %vm492_vm10, %v6810_v57, 0.0  ;;  %v6865_v49 = vsel %vm492_vm10, %v6852_v27, 0.0  ;;  %5477 = vmatprep.mubr.msk.f32.mxu0 %vm869_vm1, %v2811_v47 }
  0xdd   : > { %7887 = vst [vmem:[#allocation44_spill] sm:$0xff] %v6865_v49  ;;  %5253 = vmatprep.mubr.msk.f32.mxu1 %vm869_vm1, %v812_v26  ;;  %v725_v50 = vpop.permute.xlu1 %724  ;;  %v6894_v49 = vld [vmem:[%s6155_s22 + $0x70] sm:$0xff] }
  0xde   : > { %vm765_vm4 = vcmp.eq.s32.totalorder %v725_v50, 1  ;;  %v6870_v8 = vpop.permute.xlu0 %420  ;;  %v4015_v50 = vld [vmem:[%s6155_s22 + $0x102] sm:$0xff] }
  0xdf   : > { %v6875_v14 = vsel %vm765_vm4, %v4010_v1, 0.0  ;;  %v2812_v36 = vsel %vm765_vm4, %v4012_v35, 0.0  ;;  %v6877_v16 = vsel %vm765_vm4, %v4014_v28, 0.0  ;;  %vm493_vm9 = vcmp.eq.s32.totalorder %v6870_v8, 1 }
  0xe0   : > { %7888 = vst [vmem:[#allocation45_spill] sm:$0xff] %v6875_v14  ;;  %7889 = vst [vmem:[#allocation46_spill] sm:$0xff] %v6877_v16  ;;  %v813_v47 = vsel %vm493_vm9, %v6831_v25, 0.0  ;;  %v6886_v26 = vsel %vm493_vm9, %v6873_v40, 0.0  ;;  %5478 = vmatmul.mubr.msk.f32.gmra.mrb[26].mxu0 %vm869_vm1, %v2812_v36 }
  0xe1   : > { %7890 = vst [vmem:[#allocation47_spill] sm:$0xff] %v6886_v26  ;;  %5254 = vmatmul.mubr.msk.f32.gmra.mrb[10].mxu1 %vm869_vm1, %v813_v47  ;;  %v728_v1 = vpop.permute.xlu1 %727  ;;  %v6915_v26 = vld [vmem:[%s6155_s22 + $0x78] sm:$0xff] }
  0xe2   : > { %vm766_vm4 = vcmp.eq.s32.totalorder %v728_v1, 1  ;;  %v6891_v16 = vpop.permute.xlu0 %423  ;;  %v4016_v1 = vld [vmem:[%s6155_s22 + $0x10a] sm:$0xff] }
  0xe3   : > { %v6896_v37 = vsel %vm766_vm4, %v4011_v9, 0.0  ;;  %v2813_v14 = vsel %vm766_vm4, %v4013_v15, 0.0  ;;  %v6898_v59 = vsel %vm766_vm4, %v4015_v50, 0.0  ;;  %vm7829_vm7 = vcmp.eq.s32.totalorder %v6891_v16, 1 }
  0xe4   : > { %7891 = vst [vmem:[#allocation48_spill] sm:$0xff] %v6896_v37  ;;  %7892 = vst [vmem:[#allocation49_spill] sm:$0xff] %v6898_v59  ;;  %v814_v36 = vsel %vm7829_vm7, %v6852_v27, 0.0  ;;  %v6907_v47 = vsel %vm7829_vm7, %v6894_v49, 0.0  ;;  %5480 = vmatprep.mubr.msk.f32.mxu0 %vm869_vm1, %v2813_v14 }
  0xe5   : > { %7893 = vst [vmem:[#allocation50_spill] sm:$0xff] %v6907_v47  ;;  %5256 = vmatprep.mubr.msk.f32.mxu1 %vm869_vm1, %v814_v36  ;;  %v731_v9 = vpop.permute.xlu1 %730 }
  0xe6   : > { %vm767_vm4 = vcmp.eq.s32.totalorder %v731_v9, 1  ;;  %v6912_v59 = vpop.permute.xlu0 %426 }
  0xe7   : > { %v6917_v37 = vsel %vm767_vm4, %v4012_v35, 0.0  ;;  %v2814_v19 = vsel %vm767_vm4, %v4014_v28, 0.0  ;;  %v6919_v45 = vsel %vm767_vm4, %v4016_v1, 0.0  ;;  %vm7830_vm7 = vcmp.eq.s32.totalorder %v6912_v59, 1 }
  0xe8   : > { %7894 = vst [vmem:[#allocation51_spill] sm:$0xff] %v6917_v37  ;;  %7895 = vst [vmem:[#allocation52_spill] sm:$0xff] %v6919_v45  ;;  %v815_v14 = vsel %vm7830_vm7, %v6873_v40, 0.0  ;;  %v6928_v36 = vsel %vm7830_vm7, %v6915_v26, 0.0  ;;  %5481 = vmatmul.mubr.msk.f32.gmra.mrb[28].mxu0 %vm869_vm1, %v2814_v19  ;;  %v6938_v45 = vld [vmem:[%s6155_s22 + $0x80] sm:$0xff] }
  0xe9   : > { %7896 = vst [vmem:[#allocation53_spill] sm:$0xff] %v6928_v36  ;;  %5257 = vmatmul.mubr.msk.f32.gmra.mrb[12].mxu1 %vm869_vm1, %v815_v14  ;;  %v6932_v35 = vpop.permute.xlu1 %733 }
  0xea   : > { %7897 = vst [vmem:[#allocation54_spill] sm:$0xff] %v6932_v35  ;;  %vm7831_vm4 = vcmp.eq.s32.totalorder %v6932_v35, 1  ;;  %v6935_v9 = vpop.permute.xlu0 %429  ;;  %v6963_v35 = vld [vmem:[%s6155_s22 + $0x88] sm:$0xff] }
  0xeb   : > { %v6942_v47 = vsel %vm7831_vm4, %v4013_v15, 0.0  ;;  %v2815_v36 = vsel %vm7831_vm4, %v4015_v50, 0.0  ;;  %vm7833_vm7 = vcmp.eq.s32.totalorder %v6935_v9, 1 }
  0xec   : > { %7898 = vst [vmem:[#allocation55_spill] sm:$0xff] %v6942_v47  ;;  %v816_v19 = vsel %vm7833_vm7, %v6894_v49, 0.0  ;;  %v6953_v14 = vsel %vm7833_vm7, %v6938_v45, 0.0  ;;  %5483 = vmatprep.mubr.msk.f32.mxu0 %vm869_vm1, %v2815_v36  ;;  %v3207_v36 = vsel %vm482_vm11, %v6679_v38, 0.0  ;;  %v3208_v38 = vsel %vm483_vm14, %v6702_v29, 0.0 }
  0xed   : > { %7899 = vst [vmem:[#allocation56_spill] sm:$0xff] %v6953_v14  ;;  %5259 = vmatprep.mubr.msk.f32.mxu1 %vm869_vm1, %v816_v19  ;;  %v6957_v15 = vpop.permute.xlu1 %736 }
  0xee   : > { %7900 = vst [vmem:[#allocation57_spill] sm:$0xff] %v6957_v15  ;;  %vm7835_vm4 = vcmp.eq.s32.totalorder %v6957_v15, 1  ;;  %v6960_v50 = vpop.permute.xlu0 %432  ;;  %v6998_v15 = vld [vmem:[%s6155_s22 + $0x90] sm:$0xff] }
  0xef   : > { %v6967_v47 = vsel %vm7835_vm4, %v4014_v28, 0.0  ;;  %v2816_v14 = vsel %vm7835_vm4, %v4016_v1, 0.0  ;;  %vm497_vm7 = vcmp.eq.s32.totalorder %v6960_v50, 1  ;;  %v6989_v1 = vld [vmem:[%s6155_s22 + $0x98] sm:$0xff] }
  0xf0   : > { %7901 = vst [vmem:[#allocation58_spill] sm:$0xff] %v6967_v47  ;;  %v817_v19 = vsel %vm497_vm7, %v6915_v26, 0.0  ;;  %v6981_v37 = vsel %vm497_vm7, %v6963_v35, 0.0  ;;  %5484 = vmatmul.mubr.msk.f32.gmra.mrb[30].mxu0 %vm869_vm1, %v2816_v14  ;;  %v3203_v47 = vld [vmem:[%s6155_s22 + $0x100] sm:$0xff] }
  0xf1   : > { %7902 = vst [vmem:[#allocation59_spill] sm:$0xff] %v6981_v37  ;;  %5260 = vmatmul.mubr.msk.f32.gmra.mrb[14].mxu1 %vm869_vm1, %v817_v19  ;;  %v6985_v28 = vpop.permute.xlu1 %438  ;;  %5488 = vmatprep.mubr.msk.f32.mxu0 %vm869_vm1, %v3207_v36  ;;  %v3209_v19 = vsel %vm484_vm0, %v6724_v51, 0.0  ;;  %v7031_v51 = vld [vmem:[%s6155_s22 + $0xa8] sm:$0xff] }
  0xf2   : > { %vm499_vm11 = vcmp.eq.s32.totalorder %v6985_v28, 1  ;;  %v6992_v55 = vpop.permute.xlu0 %435  ;;  %v3205_v28 = vld [vmem:[%s6155_s22 + $0x110] sm:$0xff] }
  0xf3   : > { %v819_v14 = vsel %vm499_vm11, %v6963_v35, 0.0  ;;  %v7006_v36 = vsel %vm499_vm11, %v6989_v1, 0.0  ;;  %vm498_vm4 = vcmp.eq.s32.totalorder %v6992_v55, 1  ;;  %v3224_v55 = vsel %vm499_vm11, %v7031_v51, 0.0 }
  0xf4   : > { %7903 = vst [vmem:[#allocation60_spill] sm:$0xff] %v7006_v36  ;;  %v818_v4 = vsel %vm498_vm4, %v6938_v45, 0.0  ;;  %v7018_v29 = vsel %vm498_vm4, %v6998_v15, 0.0  ;;  %5489 = vmatmul.mubr.msk.f32.vlgmr.msra.gmra.mrb[0].mxu0 %vm869_vm1, %v3208_v38  ;;  %v7024_v36 = vld [vmem:[%s7822_s1 + $0x20] sm:$0xf]  ;;  %v3210_v38 = vsel %vm485_vm3, %v6746_v2, 0.0 }
  0xf5   : > { %7904 = vst [vmem:[#allocation61_spill] sm:$0xff] %v7018_v29  ;;  %5262 = vmatprep.mubr.msk.f32.mxu1 %vm869_vm1, %v818_v4  ;;  %v7027_v30 = vpop.permute.xlu1 %444  ;;  %5491 = vmatprep.mubr.msk.f32.mxu0 %vm869_vm1, %v3209_v19  ;;  %v7043_v4 = vld [vmem:[%s6155_s22 + $0xa0] sm:$0xff] }
  0xf6   : > { %vm501_vm14 = vcmp.eq.s32.totalorder %v7027_v30, 1  ;;  %v7034_v37 = vpop.permute.xlu0 %441  ;;  %5263 = vmatmul.mubr.msk.f32.gmra.mrb[16].mxu1 %vm869_vm1, %v819_v14  ;;  %5537 = vmatpush3.msk.msra.mxu0 %vm966_vm13, %v6522_v39  ;;  %v3211_v39 = vsel %vm486_vm5, %v6768_v48, 0.0  ;;  %v3599_v30 = vld [vmem:[%s6155_s22 + $0x31] sm:$0xff] }
  0xf7   : > { %v821_v19 = vsel %vm501_vm14, %v6989_v1, 0.0  ;;  %v7051_v29 = vsel %vm501_vm14, %v7031_v51, 0.0  ;;  %vm500_vm0 = vcmp.eq.s32.totalorder %v7034_v37, 1  ;;  %5586 = vmatprep.subr.msk.mxu0 %vm966_vm13, %v7024_v36 }
  0xf8   : > { %7905 = vst [vmem:[#allocation62_spill] sm:$0xff] %v7051_v29  ;;  %v820_v2 = vsel %vm500_vm0, %v6998_v15, 0.0  ;;  %v7065_v61 = vsel %vm500_vm0, %v7043_v4, 0.0  ;;  %5492 = vmatmul.mubr.msk.f32.gmra.mrb[2].mxu0 %vm869_vm1, %v3210_v38  ;;  %v7073_v29 = vld [vmem:[%s6155_s22 + $0xb8] sm:$0xff]  ;;  %v7083_v38 = vld [vmem:[%s6155_s22 + $0xb0] sm:$0xff] }
  0xf9   : > { %7906 = vst [vmem:[#allocation63_spill] sm:$0xff] %v7065_v61  ;;  %5265 = vmatprep.mubr.msk.f32.mxu1 %vm869_vm1, %v820_v2  ;;  %v7069_v14 = vpop.permute.xlu1 %450  ;;  %5494 = vmatprep.mubr.msk.f32.mxu0 %vm869_vm1, %v3211_v39  ;;  %v7111_v61 = vld [vmem:[%s6155_s22 + $0xc8] sm:$0xff] }
  0xfa   : > { %vm503_vm3 = vcmp.eq.s32.totalorder %v7069_v14, 1  ;;  %v7076_v48 = vpop.permute.xlu0 %447  ;;  %5266 = vmatmul.mubr.msk.f32.gmra.mrb[18].mxu1 %vm869_vm1, %v821_v19  ;;  %v3213_v19 = vsel %vm488_vm12, %v6810_v57, 0.0  ;;  %v7926_v14 = vld [vmem:[#allocation36_spill] sm:$0xff] }
  0xfb   : > { %v823_v39 = vsel %vm503_vm3, %v7031_v51, 0.0  ;;  %v7091_v2 = vsel %vm503_vm3, %v7073_v29, 0.0  ;;  %vm502_vm5 = vcmp.eq.s32.totalorder %v7076_v48, 1  ;;  %v3607_v51 = vld [vmem:[%s6155_s22 + $0x71] sm:$0xff]  ;;  %v3609_v48 = vld [vmem:[%s6155_s22 + $0x81] sm:$0xff] }
  0xfc   : > { %7907 = vst [vmem:[#allocation64_spill] sm:$0xff] %v7091_v2  ;;  %v822_v10 = vsel %vm502_vm5, %v7043_v4, 0.0  ;;  %v7103_v58 = vsel %vm502_vm5, %v7083_v38, 0.0  ;;  %5495 = vmatmul.mubr.msk.f32.gmra.mrb[4].mxu0 %vm869_vm1, %v3212_v46  ;;  %v7121_v46 = vld [vmem:[%s6155_s22 + $0xc0] sm:$0xff] }
  0xfd   : > { %7908 = vst [vmem:[#allocation65_spill] sm:$0xff] %v7103_v58  ;;  %5268 = vmatprep.mubr.msk.f32.mxu1 %vm869_vm1, %v822_v10  ;;  %v7107_v2 = vpop.permute.xlu1 %456  ;;  %5497 = vmatprep.mubr.msk.f32.mxu0 %vm869_vm1, %v3213_v19  ;;  %v7149_v58 = vld [vmem:[%s6155_s22 + $0xd8] sm:$0xff]  ;;  %v3227_v37 = vsel %vm502_vm5, %v7121_v46, 0.0 }
  0xfe   : > { %vm505_vm8 = vcmp.eq.s32.totalorder %v7107_v2, 1  ;;  %v7114_v57 = vpop.permute.xlu0 %453  ;;  %5269 = vmatmul.mubr.msk.f32.gmra.mrb[20].mxu1 %vm869_vm1, %v823_v39  ;;  %v3215_v39 = vsel %vm490_vm6, %v6852_v27, 0.0  ;;  %v3216_v27 = vsel %vm491_vm15, %v6873_v40, 0.0  ;;  %v3610_v2 = vld [vmem:[%s6155_s22 + $0x89] sm:$0xff] }
  0xff   : > { %v825_v19 = vsel %vm505_vm8, %v7073_v29, 0.0  ;;  %v7129_v10 = vsel %vm505_vm8, %v7111_v61, 0.0  ;;  %vm504_vm12 = vcmp.eq.s32.totalorder %v7114_v57, 1  ;;  %v7439_v57 = vld [vmem:[%s6155_s22 + $0x91] sm:$0xff] }
 0x100   : > { %7909 = vst [vmem:[#allocation66_spill] sm:$0xff] %v7129_v10  ;;  %v824_v25 = vsel %vm504_vm12, %v7083_v38, 0.0  ;;  %v7141_v6 = vsel %vm504_vm12, %v7121_v46, 0.0  ;;  %5498 = vmatmul.mubr.msk.f32.gmra.mrb[6].mxu0 %vm869_vm1, %v3214_v42  ;;  %v7159_v42 = vld [vmem:[%s6155_s22 + $0xd0] sm:$0xff] }
 0x101   : > { %7910 = vst [vmem:[#allocation67_spill] sm:$0xff] %v7141_v6  ;;  %5271 = vmatprep.mubr.msk.f32.mxu1 %vm869_vm1, %v824_v25  ;;  %v7145_v10 = vpop.permute.xlu1 %462  ;;  %5500 = vmatprep.mubr.msk.f32.mxu0 %vm869_vm1, %v3215_v39  ;;  %v7187_v6 = vld [vmem:[%s6155_s22 + $0xe8] sm:$0xff] }
 0x102   : > { %vm7836_vm2 = vcmp.eq.s32.totalorder %v7145_v10, 1  ;;  %v7152_v54 = vpop.permute.xlu0 %459  ;;  %5272 = vmatmul.mubr.msk.f32.gmra.mrb[22].mxu1 %vm869_vm1, %v825_v19  ;;  %v3217_v19 = vsel %vm492_vm10, %v6894_v49, 0.0  ;;  %v3218_v49 = vsel %vm493_vm9, %v6915_v26, 0.0  ;;  %vm7922_vm11 = vcmp.eq.s32.totalorder %v7145_v10, 1  ;;  %v7447_v10 = vld [vmem:[%s6155_s22 + $0x99] sm:$0xff] }
 0x103   : > { %v827_v39 = vsel %vm7836_vm2, %v7111_v61, 0.0  ;;  %v7167_v25 = vsel %vm7836_vm2, %v7149_v58, 0.0  ;;  %vm506_vm6 = vcmp.eq.s32.totalorder %v7152_v54, 1  ;;  %vm7914_vm2 = vcmp.eq.s32.totalorder %v6891_v16, 1  ;;  %v7452_v54 = vld [vmem:[%s6155_s22 + $0xa1] sm:$0xff] }
 0x104   : > { %7911 = vst [vmem:[#allocation68_spill] sm:$0xff] %v7167_v25  ;;  %v826_v33 = vsel %vm506_vm6, %v7121_v46, 0.0  ;;  %v7179_v40 = vsel %vm506_vm6, %v7159_v42, 0.0  ;;  %5501 = vmatmul.mubr.msk.f32.gmra.mrb[8].mxu0 %vm869_vm1, %v3216_v27  ;;  %v7197_v27 = vld [vmem:[%s6155_s22 + $0xe0] sm:$0xff]  ;;  %v7930_v46 = vld [vmem:[#allocation48_spill] sm:$0xff] }
 0x105   : > { %7912 = vst [vmem:[#allocation69_spill] sm:$0xff] %v7179_v40  ;;  %5274 = vmatprep.mubr.msk.f32.mxu1 %vm869_vm1, %v826_v33  ;;  %v7183_v25 = vpop.permute.xlu1 %468  ;;  %5503 = vmatprep.mubr.msk.f32.mxu0 %vm869_vm1, %v3217_v19  ;;  %v7225_v40 = vld [vmem:[%s6155_s22 + $0xf8] sm:$0xff] }
 0x106   : > { %vm7837_vm15 = vcmp.eq.s32.totalorder %v7183_v25, 1  ;;  %v7190_v60 = vpop.permute.xlu0 %465  ;;  %5275 = vmatmul.mubr.msk.f32.gmra.mrb[24].mxu1 %vm869_vm1, %v827_v39  ;;  %v3219_v39 = vsel %vm7914_vm2, %v6938_v45, 0.0  ;;  %vm7916_vm2 = vcmp.eq.s32.totalorder %v6912_v59, 1 }
 0x107   : > { %v829_v19 = vsel %vm7837_vm15, %v7149_v58, 0.0  ;;  %v7205_v33 = vsel %vm7837_vm15, %v7187_v6, 0.0  ;;  %vm7838_vm10 = vcmp.eq.s32.totalorder %v7190_v60, 1  ;;  %v3220_v16 = vsel %vm7916_vm2, %v6963_v35, 0.0 }
 0x108   : > { %7913 = vst [vmem:[#allocation70_spill] sm:$0xff] %v7205_v33  ;;  %v828_v8 = vsel %vm7838_vm10, %v7159_v42, 0.0  ;;  %v7217_v26 = vsel %vm7838_vm10, %v7197_v27, 0.0  ;;  %5504 = vmatmul.mubr.msk.f32.gmra.mrb[10].mxu0 %vm869_vm1, %v3218_v49  ;;  %v3201_v49 = vld [vmem:[%s6155_s22 + $0xf0] sm:$0xff]  ;;  %vm7918_vm10 = vcmp.eq.s32.totalorder %v6935_v9, 1 }
 0x109   : > { %7915 = vst [vmem:[#allocation71_spill] sm:$0xff] %v7217_v26  ;;  %5277 = vmatprep.mubr.msk.f32.mxu1 %vm869_vm1, %v828_v8  ;;  %v7221_v33 = vpop.permute.xlu1 %474  ;;  %5506 = vmatprep.mubr.msk.f32.mxu0 %vm869_vm1, %v3219_v39 }
 0x10a   : > { %vm511_vm9 = vcmp.eq.s32.totalorder %v7221_v33, 1  ;;  %v7228_v45 = vpop.permute.xlu0 %471  ;;  %5278 = vmatmul.mubr.msk.f32.gmra.mrb[26].mxu1 %vm869_vm1, %v829_v19  ;;  %v3221_v19 = vsel %vm7918_vm10, %v6998_v15, 0.0  ;;  %v1519_v15 = vld [vmem:[%s6155_s22 + $0x2] sm:$0xff]  ;;  %v7475_v33 = vld [vmem:[%s6155_s22 + $0xb9] sm:$0xff] }
 0x10b   : > { %v831_v8 = vsel %vm511_vm9, %v7187_v6, 0.0  ;;  %v7241_v39 = vsel %vm511_vm9, %v7225_v40, 0.0  ;;  %vm510_vm15 = vcmp.eq.s32.totalorder %v7228_v45, 1  ;;  %v7480_v45 = vld [vmem:[%s6155_s22 + $0xc1] sm:$0xff] }
 0x10c   : > { %7917 = vst [vmem:[#allocation72_spill] sm:$0xff] %v7241_v39  ;;  %v830_v59 = vsel %vm510_vm15, %v7197_v27, 0.0  ;;  %v7252_v35 = vsel %vm510_vm15, %v3201_v49, 0.0  ;;  %5507 = vmatmul.mubr.msk.f32.gmra.mrb[12].mxu0 %vm869_vm1, %v3220_v16  ;;  %v3204_v39 = vld [vmem:[%s6155_s22 + $0x108] sm:$0xff] }
 0x10d   : > { %7919 = vst [vmem:[#allocation73_spill] sm:$0xff] %v7252_v35  ;;  %5280 = vmatprep.mubr.msk.f32.mxu1 %vm869_vm1, %v830_v59  ;;  %v7256_v26 = vpop.permute.xlu1 %480  ;;  %5509 = vmatprep.mubr.msk.f32.mxu0 %vm869_vm1, %v3221_v19  ;;  %v3222_v35 = vsel %vm497_vm7, %v6989_v1, 0.0  ;;  %v3223_v59 = vsel %vm498_vm4, %v7043_v4, 0.0  ;;  %vm7920_vm7 = vcmp.eq.s32.totalorder %v6484_v22, 1  ;;  %v1520_v1 = vld [vmem:[%s6155_s22 + $0xa] sm:$0xff]  ;;  %v3225_v4 = vsel %vm500_vm0, %v7083_v38, 0.0 }
 0x10e   : > { %vm513_vm2 = vcmp.eq.s32.totalorder %v7256_v26, 1  ;;  %v478_v9 = vpop.permute.xlu0 %477  ;;  %5281 = vmatmul.mubr.msk.f32.gmra.mrb[28].mxu1 %vm869_vm1, %v831_v8  ;;  %v1551_v50 = vsel %vm7920_vm7, %v1519_v15, 0.0  ;;  %vm7921_vm4 = vcmp.eq.s32.totalorder %v6503_v13, 1  ;;  %v3226_v22 = vsel %vm501_vm14, %v7073_v29, 0.0  ;;  %v7314_v13 = vld [vmem:[%s7822_s1 + $0x10] sm:$0xf] }
 0x10f   : > { %v833_v16 = vsel %vm513_vm2, %v7225_v40, 0.0  ;;  %v7272_v19 = vsel %vm513_vm2, %v3204_v39, 0.0  ;;  %vm512_vm10 = vcmp.eq.s32.totalorder %v478_v9, 1  ;;  %vm7923_vm14 = vcmp.eq.s32.totalorder %v7190_v60, 1  ;;  %v7928_v38 = vld [vmem:[#allocation42_spill] sm:$0xff] }
 0x110   : > { %v832_v8 = vsel %vm512_vm10, %v3201_v49, 0.0  ;;  %v7279_v0 = vsel %vm512_vm10, %v3203_v47, 0.0  ;;  %5510 = vmatmul.mubr.msk.f32.gmra.mrb[14].mxu0 %vm869_vm1, %v3222_v35  ;;  %v1552_v35 = vsel %vm7921_vm4, %v1520_v1, 0.0  ;;  %vm7924_vm0 = vcmp.eq.s32.totalorder %v7183_v25, 1  ;;  %v7461_v25 = vld [vmem:[%s6155_s22 + $0xa9] sm:$0xff]  ;;  %v7466_v60 = vld [vmem:[%s6155_s22 + $0xb1] sm:$0xff] }
 0x111   : > { %5283 = vmatprep.mubr.msk.f32.mxu1 %vm869_vm1, %v832_v8  ;;  %5512 = vmatprep.mubr.msk.f32.mxu0 %vm869_vm1, %v3223_v59  ;;  %v3237_v29 = vsel %vm512_vm10, %v3205_v28, 0.0  ;;  %v7935_v26 = vld [vmem:[#allocation22_spill] sm:$0xff]  ;;  %v7940_v1 = vld [vmem:[#allocation32_spill] sm:$0xff] }
 0x112   : > { %5284 = vmatmul.mubr.msk.f32.gmra.mrb[30].mxu1 %vm869_vm1, %v833_v16  ;;  %v7937_v9 = vld [vmem:[#allocation26_spill] sm:$0xff]  ;;  %v7938_v16 = vld [vmem:[#allocation28_spill] sm:$0xff] }
 0x113   : > { %5288 = vmatprep.mubr.msk.f32.mxu1 %vm869_vm1, %v1551_v50  ;;  %v7496_v15 = vld [vmem:[%s6155_s22 + $0xd1] sm:$0xff]  ;;  %v7505_v59 = vld [vmem:[%s6155_s22 + $0xd9] sm:$0xff]  ;;  %v7510_v50 = vld [vmem:[%s6155_s22 + $0xe1] sm:$0xff] }
 0x114   : > { %5513 = vmatmul.mubr.msk.f32.gmra.mrb[16].mxu0 %vm869_vm1, %v3224_v55  ;;  %v7939_v8 = vld [vmem:[#allocation30_spill] sm:$0xff]  ;;  %v7519_v55 = vld [vmem:[%s6155_s22 + $0xe9] sm:$0xff] }
 0x115   : > { %5515 = vmatprep.mubr.msk.f32.mxu0 %vm869_vm1, %v3225_v4  ;;  %v7941_v4 = vld [vmem:[#allocation35_spill] sm:$0xff]  ;;  %v7948_v28 = vld [vmem:[#allocation56_spill] sm:$0xff] }
 0x116   : > { %5289 = vmatmul.mubr.msk.f32.vlgmr.msra.gmra.mrb[0].mxu1 %vm869_vm1, %v1552_v35  ;;  %v7524_v35 = vld [vmem:[%s6155_s22 + $0xf1] sm:$0xff] }
 0x117   : > { %5337 = vmatpush3.msk.msra.mxu1 %vm966_vm13, %v6670_v12  ;;  %5291 = vmatprep.mubr.msk.f32.mxu1 %vm869_vm1, %v6487_v23  ;;  %v3228_v23 = vsel %vm503_vm3, %v7111_v61, 0.0  ;;  %v3229_v12 = vsel %vm504_vm12, %v7159_v42, 0.0  ;;  %v7932_v42 = vld [vmem:[#allocation55_spill] sm:$0xff] }
 0x118   : > { %5516 = vmatmul.mubr.msk.f32.gmra.mrb[18].mxu0 %vm869_vm1, %v3226_v22  ;;  %5636 = vmatprep.subr.msk.mxu1 %vm966_vm13, %v7314_v13  ;;  %v7942_v22 = vld [vmem:[#allocation38_spill] sm:$0xff] }
 0x119   : > { %5518 = vmatprep.mubr.msk.f32.mxu0 %vm869_vm1, %v3227_v37  ;;  %v7533_v37 = vld [vmem:[%s6155_s22 + $0xf9] sm:$0xff] }
 0x11a   : > { %5292 = vmatmul.mubr.msk.f32.gmra.mrb[2].mxu1 %vm869_vm1, %v6506_v31  ;;  %v3230_v31 = vsel %vm505_vm8, %v7149_v58, 0.0  ;;  %v7929_v58 = vld [vmem:[#allocation45_spill] sm:$0xff] }
 0x11b   : > { %5294 = vmatprep.mubr.msk.f32.mxu1 %vm869_vm1, %v6539_v24  ;;  %v3231_v24 = vsel %vm506_vm6, %v7197_v27, 0.0  ;;  %v7934_v27 = vld [vmem:[#allocation20_spill] sm:$0xff] }
 0x11c   : > { %5519 = vmatmul.mubr.msk.f32.gmra.mrb[20].mxu0 %vm869_vm1, %v3228_v23  ;;  %v7538_v23 = vld [vmem:[%s6155_s22 + $0x101] sm:$0xff] }
 0x11d   : > { %5521 = vmatprep.mubr.msk.f32.mxu0 %vm869_vm1, %v3229_v12  ;;  %v7944_v12 = vld [vmem:[#allocation44_spill] sm:$0xff] }
 0x11e   : > { %5295 = vmatmul.mubr.msk.f32.gmra.mrb[4].mxu1 %vm869_vm1, %v6531_v44  ;;  %v3232_v44 = vsel %vm7922_vm11, %v7187_v6, 0.0  ;;  %v7931_v6 = vld [vmem:[#allocation51_spill] sm:$0xff] }
 0x11f   : > { %5297 = vmatprep.mubr.msk.f32.mxu1 %vm869_vm1, %v6554_v56  ;;  %v3233_v56 = vsel %vm7923_vm14, %v3201_v49, 0.0  ;;  %v7936_v49 = vld [vmem:[#allocation24_spill] sm:$0xff] }
 0x120   : > { %5522 = vmatmul.mubr.msk.f32.gmra.mrb[22].mxu0 %vm869_vm1, %v3230_v31  ;;  %v7547_v31 = vld [vmem:[%s6155_s22 + $0x109] sm:$0xff] }
 0x121   : > { %5524 = vmatprep.mubr.msk.f32.mxu0 %vm869_vm1, %v3231_v24  ;;  %v7945_v24 = vld [vmem:[#allocation47_spill] sm:$0xff] }
 0x122   : > { %5298 = vmatmul.mubr.msk.f32.gmra.mrb[6].mxu1 %vm869_vm1, %v6548_v52  ;;  %v3234_v52 = vsel %vm7924_vm0, %v7225_v40, 0.0  ;;  %v7933_v40 = vld [vmem:[#allocation58_spill] sm:$0xff] }
 0x123   : > { %5300 = vmatprep.mubr.msk.f32.mxu1 %vm869_vm1, %v6569_v34  ;;  %v3235_v34 = vsel %vm510_vm15, %v3203_v47, 0.0  ;;  %v3597_v47 = vld [vmem:[%s6155_s22 + $0x21] sm:$0xff] }
 0x124   : > { %5525 = vmatmul.mubr.msk.f32.gmra.mrb[24].mxu0 %vm869_vm1, %v3232_v44  ;;  %v3627_v44 = vld [vmem:[%s6155_s22 + $0x111] sm:$0xff] }
 0x125   : > { %5527 = vmatprep.mubr.msk.f32.mxu0 %vm869_vm1, %v3233_v56  ;;  %v7946_v56 = vld [vmem:[#allocation50_spill] sm:$0xff] }
 0x126   : > { %5301 = vmatmul.mubr.msk.f32.gmra.mrb[8].mxu1 %vm869_vm1, %v6563_v62  ;;  %v3236_v62 = vsel %vm511_vm9, %v3204_v39, 0.0  ;;  %v7491_v39 = vld [vmem:[%s6155_s22 + $0xc9] sm:$0xff] }
 0x127   : > { %5303 = vmatprep.mubr.msk.f32.mxu1 %vm869_vm1, %v6584_v7  ;;  %v3206_v7 = vld [vmem:[%s6155_s22 + $0x118] sm:$0xff] }
 0x128   : > { %5528 = vmatmul.mubr.msk.f32.gmra.mrb[26].mxu0 %vm869_vm1, %v3234_v52  ;;  %v3628_v52 = vld [vmem:[%s6155_s22 + $0x119] sm:$0xff] }
 0x129   : > { %5530 = vmatprep.mubr.msk.f32.mxu0 %vm869_vm1, %v3235_v34  ;;  %v7947_v34 = vld [vmem:[#allocation53_spill] sm:$0xff] }
 0x12a   : > { %5304 = vmatmul.mubr.msk.f32.gmra.mrb[10].mxu1 %vm869_vm1, %v6578_v63  ;;  %v3238_v63 = vsel %vm513_vm2, %v3206_v7, 0.0  ;;  %v7950_v7 = vld [vmem:[#allocation59_spill] sm:$0xff] }
 0x12b   : > { %5306 = vmatprep.mubr.msk.f32.mxu1 %vm869_vm1, %v6599_v3  ;;  %v3598_v3 = vld [vmem:[%s6155_s22 + $0x29] sm:$0xff] }
 0x12c   : > { %5531 = vmatmul.mubr.msk.f32.gmra.mrb[28].mxu0 %vm869_vm1, %v3236_v62  ;;  %v7949_v62 = vld [vmem:[#allocation4_spill] sm:$0xff] }
 0x12d   : > { %5533 = vmatprep.mubr.msk.f32.mxu0 %vm869_vm1, %v3237_v29  ;;  %v7951_v29 = vld [vmem:[#allocation61_spill] sm:$0xff] }
 0x12e   : > { %5307 = vmatmul.mubr.msk.f32.gmra.mrb[12].mxu1 %vm869_vm1, %v6593_v18  ;;  %v3600_v18 = vld [vmem:[%s6155_s22 + $0x39] sm:$0xff] }
 0x12f   : > { %5309 = vmatprep.mubr.msk.f32.mxu1 %vm869_vm1, %v6617_v43  ;;  %v4410_v43 = vstv %s4409_s14 }
 0x130   : > { %5534 = vmatmul.mubr.msk.f32.gmra.mrb[30].mxu0 %vm869_vm1, %v3238_v63  ;;  %5908 = vrcp.f32 %v4410_v43  ;;  %v7953_v63 = vld [vmem:[#allocation3_spill] sm:$0xff]  ;;  %v7958_v43 = vld [vmem:[#allocation62_spill] sm:$0xff] }
 0x131   : > { %5538 = vmatprep.mubr.msk.f32.mxu0 %vm869_vm1, %v3597_v47  ;;  %v7952_v47 = vld [vmem:[#allocation6_spill] sm:$0xff] }
 0x132   : > { %5310 = vmatmul.mubr.msk.f32.gmra.mrb[14].mxu1 %vm869_vm1, %v6610_v41  ;;  %v3601_v41 = vld [vmem:[%s6155_s22 + $0x41] sm:$0xff] }
 0x133   : > { %5312 = vmatprep.mubr.msk.f32.mxu1 %vm869_vm1, %v6630_v32  ;;  %v3602_v32 = vld [vmem:[%s6155_s22 + $0x49] sm:$0xff] }
 0x134   : > { %5539 = vmatmul.mubr.msk.f32.vlgmr.msra.gmra.mrb[0].mxu0 %vm869_vm1, %v3598_v3  ;;  %v7954_v3 = vld [vmem:[#allocation60_spill] sm:$0xff] }
 0x135   : > { %5587 = vmatpush3.msk.msra.mxu0 %vm966_vm13, %v7024_v36  ;;  %5541 = vmatprep.mubr.msk.f32.mxu0 %vm869_vm1, %v3599_v30  ;;  %v3603_v36 = vld [vmem:[%s6155_s22 + $0x51] sm:$0xff]  ;;  %v7955_v30 = vld [vmem:[#allocation63_spill] sm:$0xff] }
 0x136   : > { %5313 = vmatmul.mubr.msk.f32.gmra.mrb[16].mxu1 %vm869_vm1, %v6653_v5  ;;  %v3604_v5 = vld [vmem:[%s6155_s22 + $0x59] sm:$0xff] }
 0x137   : > { %5315 = vmatprep.mubr.msk.f32.mxu1 %vm869_vm1, %v6681_v17  ;;  %v3605_v17 = vld [vmem:[%s6155_s22 + $0x61] sm:$0xff] }
 0x138   : > { %5542 = vmatmul.mubr.msk.f32.gmra.mrb[2].mxu0 %vm869_vm1, %v3600_v18  ;;  %v7956_v18 = vld [vmem:[#allocation5_spill] sm:$0xff] }
 0x139   : > { %5544 = vmatprep.mubr.msk.f32.mxu0 %vm869_vm1, %v3601_v41  ;;  %v7957_v41 = vld [vmem:[#allocation8_spill] sm:$0xff] }
 0x13a   : > { %5316 = vmatmul.mubr.msk.f32.gmra.mrb[18].mxu1 %vm869_vm1, %v6705_v21  ;;  %v3606_v21 = vld [vmem:[%s6155_s22 + $0x69] sm:$0xff]  ;;  %v5909_v61 = vpop.eup %5908 }
 0x13b   : > { %5318 = vmatprep.mubr.msk.f32.mxu1 %vm869_vm1, %v6727_v53  ;;  %v7925_v53 = vld [vmem:[#allocation33_spill] sm:$0xff]  ;;  %5895 = vpush %v5909_v61  ;;  %v7966_v61 = vld [vmem:[#allocation66_spill] sm:$0xff] }
 0x13c   : > { %5545 = vmatmul.mubr.msk.f32.gmra.mrb[4].mxu0 %vm869_vm1, %v3602_v32  ;;  %v7959_v32 = vld [vmem:[#allocation65_spill] sm:$0xff] }
 0x13d   : > { %5547 = vmatprep.mubr.msk.f32.mxu0 %vm869_vm1, %v3603_v36  ;;  %v7960_v36 = vld [vmem:[#allocation7_spill] sm:$0xff] }
 0x13e   : > { %5319 = vmatmul.mubr.msk.f32.gmra.mrb[20].mxu1 %vm869_vm1, %v6749_v11  ;;  %v7927_v11 = vld [vmem:[#allocation39_spill] sm:$0xff] }
 0x13f   : > { %5321 = vmatprep.mubr.msk.f32.mxu1 %vm869_vm1, %v6770_v20  ;;  %v3608_v20 = vld [vmem:[%s6155_s22 + $0x79] sm:$0xff] }
 0x140   : > { %5548 = vmatmul.mubr.msk.f32.gmra.mrb[6].mxu0 %vm869_vm1, %v3604_v5  ;;  %v7961_v5 = vld [vmem:[#allocation10_spill] sm:$0xff] }
 0x141   : > { %5550 = vmatprep.mubr.msk.f32.mxu0 %vm869_vm1, %v3605_v17  ;;  %v7962_v17 = vld [vmem:[#allocation64_spill] sm:$0xff] }
 0x142   : > { %5322 = vmatmul.mubr.msk.f32.gmra.mrb[22].mxu1 %vm869_vm1, %v7925_v53  ;;  %v7964_v53 = vld [vmem:[#allocation9_spill] sm:$0xff] }
 0x143   : > { %5324 = vmatprep.mubr.msk.f32.mxu1 %vm869_vm1, %v7926_v14  ;;  %v7967_v14 = vld [vmem:[#allocation69_spill] sm:$0xff] }
 0x144   : > { %5551 = vmatmul.mubr.msk.f32.gmra.mrb[8].mxu0 %vm869_vm1, %v3606_v21  ;;  %v7963_v21 = vld [vmem:[#allocation67_spill] sm:$0xff] }
 0x145   : > { %5553 = vmatprep.mubr.msk.f32.mxu0 %vm869_vm1, %v3607_v51  ;;  %v7965_v51 = vld [vmem:[#allocation12_spill] sm:$0xff] }
 0x146   : > { %5325 = vmatmul.mubr.msk.f32.gmra.mrb[24].mxu1 %vm869_vm1, %v7927_v11  ;;  %v7969_v11 = vld [vmem:[#allocation14_spill] sm:$0xff] }
 0x147   : > { %5327 = vmatprep.mubr.msk.f32.mxu1 %vm869_vm1, %v7928_v38  ;;  %v7971_v38 = vld [vmem:[#allocation71_spill] sm:$0xff] }
 0x148   : > { %5554 = vmatmul.mubr.msk.f32.gmra.mrb[10].mxu0 %vm869_vm1, %v3608_v20  ;;  %v7968_v20 = vld [vmem:[#allocation11_spill] sm:$0xff] }
 0x149   : > { %5556 = vmatprep.mubr.msk.f32.mxu0 %vm869_vm1, %v3609_v48  ;;  %v7970_v48 = vld [vmem:[#allocation68_spill] sm:$0xff] }
 0x14a   : > { %5328 = vmatmul.mubr.msk.f32.gmra.mrb[26].mxu1 %vm869_vm1, %v7929_v58  ;;  %v7973_v58 = vld [vmem:[#allocation16_spill] sm:$0xff] }
 0x14b   : > { %5330 = vmatprep.mubr.msk.f32.mxu1 %vm869_vm1, %v7930_v46  ;;  %v7974_v46 = vld [vmem:[#allocation70_spill] sm:$0xff] }
 0x14c   : > { %5557 = vmatmul.mubr.msk.f32.gmra.mrb[12].mxu0 %vm869_vm1, %v3610_v2  ;;  %v7972_v2 = vld [vmem:[#allocation13_spill] sm:$0xff] }
 0x14d   : > { %5559 = vmatprep.mubr.msk.f32.mxu0 %vm869_vm1, %v7439_v57 }
 0x14e   : > { %5331 = vmatmul.mubr.msk.f32.gmra.mrb[28].mxu1 %vm869_vm1, %v7931_v6  ;;  %v7975_v6 = vld [vmem:[#allocation73_spill] sm:$0xff] }
 0x14f   : > { %5333 = vmatprep.mubr.msk.f32.mxu1 %vm869_vm1, %v7932_v42  ;;  %v7976_v42 = vld [vmem:[#allocation15_spill] sm:$0xff] }
 0x150   : > { %5560 = vmatmul.mubr.msk.f32.gmra.mrb[14].mxu0 %vm869_vm1, %v7447_v10 }
 0x151   : > { %5562 = vmatprep.mubr.msk.f32.mxu0 %vm869_vm1, %v7452_v54 }
 0x152   : > { %5334 = vmatmul.mubr.msk.f32.gmra.mrb[30].mxu1 %vm869_vm1, %v7933_v40  ;;  %v7977_v40 = vld [vmem:[#allocation18_spill] sm:$0xff] }
 0x153   : > { %5338 = vmatprep.mubr.msk.f32.mxu1 %vm869_vm1, %v7934_v27  ;;  %v7978_v27 = vld [vmem:[#allocation72_spill] sm:$0xff] }
 0x154   : > { %5563 = vmatmul.mubr.msk.f32.gmra.mrb[16].mxu0 %vm869_vm1, %v7461_v25 }
 0x155   : > { %5565 = vmatprep.mubr.msk.f32.mxu0 %vm869_vm1, %v7466_v60 }
 0x156   : > { %5339 = vmatmul.mubr.msk.f32.vlgmr.msra.gmra.mrb[0].mxu1 %vm869_vm1, %v7935_v26  ;;  %v7979_v26 = vld [vmem:[#allocation17_spill] sm:$0xff] }
 0x157   : > { %5637 = vmatpush3.msk.msra.mxu1 %vm966_vm13, %v7314_v13  ;;  %5341 = vmatprep.mubr.msk.f32.mxu1 %vm869_vm1, %v7936_v49  ;;  %v7943_v13 = vld [vmem:[#allocation41_spill] sm:$0xff]  ;;  %v7980_v49 = vld [vmem:[#allocation19_spill] sm:$0xff] }
 0x158   : > { %5566 = vmatmul.mubr.msk.f32.gmra.mrb[18].mxu0 %vm869_vm1, %v7475_v33 }
 0x159   : > { %5568 = vmatprep.mubr.msk.f32.mxu0 %vm869_vm1, %v7480_v45 }
 0x15a   : > { %5342 = vmatmul.mubr.msk.f32.gmra.mrb[2].mxu1 %vm869_vm1, %v7937_v9  ;;  %v7981_v9 = vld [vmem:[#allocation21_spill] sm:$0xff] }
 0x15b   : > { %5344 = vmatprep.mubr.msk.f32.mxu1 %vm869_vm1, %v7938_v16  ;;  %v7982_v16 = vld [vmem:[#allocation23_spill] sm:$0xff] }
 0x15c   : > { %5569 = vmatmul.mubr.msk.f32.gmra.mrb[20].mxu0 %vm869_vm1, %v7491_v39 }
 0x15d   : > { %5571 = vmatprep.mubr.msk.f32.mxu0 %vm869_vm1, %v7496_v15 }
 0x15e   : > { %5345 = vmatmul.mubr.msk.f32.gmra.mrb[4].mxu1 %vm869_vm1, %v7939_v8  ;;  %v7984_v8 = vld [vmem:[#allocation27_spill] sm:$0xff] }
 0x15f   : > { %5347 = vmatprep.mubr.msk.f32.mxu1 %vm869_vm1, %v7940_v1 }
 0x160   : > { %5572 = vmatmul.mubr.msk.f32.gmra.mrb[22].mxu0 %vm869_vm1, %v7505_v59 }
 0x161   : > { %5574 = vmatprep.mubr.msk.f32.mxu0 %vm869_vm1, %v7510_v50 }
 0x162   : > { %5348 = vmatmul.mubr.msk.f32.gmra.mrb[6].mxu1 %vm869_vm1, %v7941_v4  ;;  %v7995_v4 = vld [vmem:[#allocation52_spill] sm:$0xff] }
 0x163   : > { %5350 = vmatprep.mubr.msk.f32.mxu1 %vm869_vm1, %v7942_v22 }
 0x164   : > { %5575 = vmatmul.mubr.msk.f32.gmra.mrb[24].mxu0 %vm869_vm1, %v7519_v55 }
 0x165   : > { %5577 = vmatprep.mubr.msk.f32.mxu0 %vm869_vm1, %v7524_v35 }
 0x166   : > { %5351 = vmatmul.mubr.msk.f32.gmra.mrb[8].mxu1 %vm869_vm1, %v7943_v13 }
 0x167   : > { %5353 = vmatprep.mubr.msk.f32.mxu1 %vm869_vm1, %v7944_v12 }
 0x168   : > { %5578 = vmatmul.mubr.msk.f32.gmra.mrb[26].mxu0 %vm869_vm1, %v7533_v37 }
 0x169   : > { %5580 = vmatprep.mubr.msk.f32.mxu0 %vm869_vm1, %v7538_v23 }
 0x16a   : > { %5354 = vmatmul.mubr.msk.f32.gmra.mrb[10].mxu1 %vm869_vm1, %v7945_v24 }
 0x16b   : > { %5356 = vmatprep.mubr.msk.f32.mxu1 %vm869_vm1, %v7946_v56 }
 0x16c   : > { %5581 = vmatmul.mubr.msk.f32.gmra.mrb[28].mxu0 %vm869_vm1, %v7547_v31 }
 0x16d   : > { %5583 = vmatprep.mubr.msk.f32.mxu0 %vm869_vm1, %v3627_v44 }
 0x16e   : > { %5357 = vmatmul.mubr.msk.f32.gmra.mrb[12].mxu1 %vm869_vm1, %v7947_v34 }
 0x16f   : > { %5359 = vmatprep.mubr.msk.f32.mxu1 %vm869_vm1, %v7948_v28 }
 0x170   : > { %5584 = vmatmul.mubr.msk.f32.gmra.mrb[30].mxu0 %vm869_vm1, %v3628_v52 }
 0x171   : > { %5588 = vmatprep.mubr.msk.f32.mxu0 %vm869_vm1, %v7949_v62 }
 0x172   : > { %5360 = vmatmul.mubr.msk.f32.gmra.mrb[14].mxu1 %vm869_vm1, %v7950_v7 }
 0x173   : > { %5362 = vmatprep.mubr.msk.f32.mxu1 %vm869_vm1, %v7951_v29 }
 0x174   : > { %5589 = vmatmul.mubr.msk.f32.vlgmr.msra.gmra.mrb[0].mxu0 %vm869_vm1, %v7952_v47 }
 0x175   : > { %5591 = vmatprep.mubr.msk.f32.mxu0 %vm869_vm1, %v7953_v63 }
 0x176   : > { %5363 = vmatmul.mubr.msk.f32.gmra.mrb[16].mxu1 %vm869_vm1, %v7954_v3 }
 0x177   : > { %5365 = vmatprep.mubr.msk.f32.mxu1 %vm869_vm1, %v7955_v30 }
 0x178   : > { %5592 = vmatmul.mubr.msk.f32.gmra.mrb[2].mxu0 %vm869_vm1, %v7956_v18 }
 0x179   : > { %5594 = vmatprep.mubr.msk.f32.mxu0 %vm869_vm1, %v7957_v41  ;;  %v7711_v41 = vld [vmem:[%s7823_s2] ss:$0 sm:$0xff] }
 0x17a   : > { %5366 = vmatmul.mubr.msk.f32.gmra.mrb[18].mxu1 %vm869_vm1, %v7958_v43 }
 0x17b   : > { %5368 = vmatprep.mubr.msk.f32.mxu1 %vm869_vm1, %v7959_v32 }
 0x17c   : > { %5595 = vmatmul.mubr.msk.f32.gmra.mrb[4].mxu0 %vm869_vm1, %v7960_v36 }
 0x17d   : > { %5597 = vmatprep.mubr.msk.f32.mxu0 %vm869_vm1, %v7961_v5 }
 0x17e   : > { %5369 = vmatmul.mubr.msk.f32.gmra.mrb[20].mxu1 %vm869_vm1, %v7962_v17 }
 0x17f   : > { %5371 = vmatprep.mubr.msk.f32.mxu1 %vm869_vm1, %v7963_v21 }
 0x180   : > { %5598 = vmatmul.mubr.msk.f32.gmra.mrb[6].mxu0 %vm869_vm1, %v7964_v53 }
 0x181   : > { %5600 = vmatprep.mubr.msk.f32.mxu0 %vm869_vm1, %v7965_v51 }
 0x182   : > { %5372 = vmatmul.mubr.msk.f32.gmra.mrb[22].mxu1 %vm869_vm1, %v7966_v61 }
 0x183   : > { %5374 = vmatprep.mubr.msk.f32.mxu1 %vm869_vm1, %v7967_v14 }
 0x184   : > { %5601 = vmatmul.mubr.msk.f32.gmra.mrb[8].mxu0 %vm869_vm1, %v7968_v20 }
 0x185   : > { %5603 = vmatprep.mubr.msk.f32.mxu0 %vm869_vm1, %v7969_v11 }
 0x186   : > { %5375 = vmatmul.mubr.msk.f32.gmra.mrb[24].mxu1 %vm869_vm1, %v7970_v48 }
 0x187   : > { %5377 = vmatprep.mubr.msk.f32.mxu1 %vm869_vm1, %v7971_v38 }
 0x188   : > { %5604 = vmatmul.mubr.msk.f32.gmra.mrb[10].mxu0 %vm869_vm1, %v7972_v2 }
 0x189   : > { %5606 = vmatprep.mubr.msk.f32.mxu0 %vm869_vm1, %v7973_v58 }
 0x18a   : > { %5378 = vmatmul.mubr.msk.f32.gmra.mrb[26].mxu1 %vm869_vm1, %v7974_v46 }
 0x18b   : > { %5380 = vmatprep.mubr.msk.f32.mxu1 %vm869_vm1, %v7975_v6 }
 0x18c   : > { %5607 = vmatmul.mubr.msk.f32.gmra.mrb[12].mxu0 %vm869_vm1, %v7976_v42 }
 0x18d   : > { %5609 = vmatprep.mubr.msk.f32.mxu0 %vm869_vm1, %v7977_v40 }
 0x18e   : > { %5381 = vmatmul.mubr.msk.f32.gmra.mrb[28].mxu1 %vm869_vm1, %v7978_v27 }
 0x18f   : > { %5383 = vmatprep.mubr.msk.f32.mxu1 %vm869_vm1, %v7279_v0  ;;  %v7983_v0 = vld [vmem:[#allocation25_spill] sm:$0xff] }
 0x190   : > { %5610 = vmatmul.mubr.msk.f32.gmra.mrb[14].mxu0 %vm869_vm1, %v7979_v26 }
 0x191   : > { %5612 = vmatprep.mubr.msk.f32.mxu0 %vm869_vm1, %v7980_v49 }
 0x192   : > { %5384 = vmatmul.mubr.msk.f32.gmra.mrb[30].mxu1 %vm869_vm1, %v7272_v19  ;;  %v7985_v19 = vld [vmem:[#allocation29_spill] sm:$0xff] }
 0x193   : > { %5412 = vmatprep.mubr.msk.f32.mxu1 %vm869_vm1, %v7439_v57  ;;  %v7986_v57 = vld [vmem:[#allocation31_spill] sm:$0xff] }
 0x194   : > { %5613 = vmatmul.mubr.msk.f32.gmra.mrb[16].mxu0 %vm869_vm1, %v7981_v9 }
 0x195   : > { %5615 = vmatprep.mubr.msk.f32.mxu0 %vm869_vm1, %v7982_v16 }
 0x196   : > { %5413 = vmatmul.mubr.msk.f32.vlgmr.msra.gmra.mrb[16].mxu1 %vm869_vm1, %v7447_v10  ;;  %v7987_v10 = vld [vmem:[#allocation34_spill] sm:$0xff] }
 0x197   : > { %5415 = vmatprep.mubr.msk.f32.mxu1 %vm869_vm1, %v7452_v54  ;;  %v7988_v54 = vld [vmem:[#allocation37_spill] sm:$0xff] }
 0x198   : > { %5616 = vmatmul.mubr.msk.f32.gmra.mrb[18].mxu0 %vm869_vm1, %v7983_v0 }
 0x199   : > { %5618 = vmatprep.mubr.msk.f32.mxu0 %vm869_vm1, %v7984_v8 }
 0x19a   : > { %5416 = vmatmul.mubr.msk.f32.gmra.mrb[18].mxu1 %vm869_vm1, %v7461_v25  ;;  %v7989_v25 = vld [vmem:[#allocation40_spill] sm:$0xff] }
 0x19b   : > { %5418 = vmatprep.mubr.msk.f32.mxu1 %vm869_vm1, %v7466_v60  ;;  %v7990_v60 = vld [vmem:[#allocation43_spill] sm:$0xff] }
 0x19c   : > { %5619 = vmatmul.mubr.msk.f32.gmra.mrb[20].mxu0 %vm869_vm1, %v7985_v19 }
 0x19d   : > { %5621 = vmatprep.mubr.msk.f32.mxu0 %vm869_vm1, %v7986_v57 }
 0x19e   : > { %5419 = vmatmul.mubr.msk.f32.gmra.mrb[20].mxu1 %vm869_vm1, %v7475_v33  ;;  %v7991_v33 = vld [vmem:[#allocation46_spill] sm:$0xff] }
 0x19f   : > { %5421 = vmatprep.mubr.msk.f32.mxu1 %vm869_vm1, %v7480_v45  ;;  %v4017_v45 = vld [vmem:[%s6155_s22 + $0x112] sm:$0xff] }
 0x1a0   : > { %5622 = vmatmul.mubr.msk.f32.gmra.mrb[22].mxu0 %vm869_vm1, %v7987_v10 }
 0x1a1   : > { %5624 = vmatprep.mubr.msk.f32.mxu0 %vm869_vm1, %v7988_v54 }
 0x1a2   : > { %5422 = vmatmul.mubr.msk.f32.gmra.mrb[22].mxu1 %vm869_vm1, %v7491_v39  ;;  %v7992_v39 = vld [vmem:[#allocation49_spill] sm:$0xff] }
 0x1a3   : > { %5424 = vmatprep.mubr.msk.f32.mxu1 %vm869_vm1, %v7496_v15  ;;  %v7993_v15 = vld [vmem:[#allocation54_spill] sm:$0xff] }
 0x1a4   : > { %5625 = vmatmul.mubr.msk.f32.gmra.mrb[24].mxu0 %vm869_vm1, %v7989_v25  ;;  %vm7994_vm13 = vcmp.eq.s32.totalorder %v7993_v15, 1 }
 0x1a5   : > { %5627 = vmatprep.mubr.msk.f32.mxu0 %vm869_vm1, %v7990_v60  ;;  %v4049_v1 = vsel %vm7994_vm13, %v4017_v45, 0.0 }
 0x1a6   : > { %5425 = vmatmul.mubr.msk.f32.gmra.mrb[24].mxu1 %vm869_vm1, %v7505_v59  ;;  %v4018_v59 = vld [vmem:[%s6155_s22 + $0x11a] sm:$0xff]  ;;  %s5896_s22 = spop %5895 }
 0x1a7   : > { %5427 = vmatprep.mubr.msk.f32.mxu1 %vm869_vm1, %v7510_v50  ;;  %v7996_v50 = vld [vmem:[#allocation57_spill] sm:$0xff]  ;;  %v7705_v63 = vstv %s5896_s22 }
 0x1a8   : > { %5628 = vmatmul.mubr.msk.f32.gmra.mrb[26].mxu0 %vm869_vm1, %v7991_v33  ;;  %vm7997_vm3 = vcmp.eq.s32.totalorder %v7996_v50, 1 }
 0x1a9   : > { %5630 = vmatprep.mubr.msk.f32.mxu0 %vm869_vm1, %v7992_v39  ;;  %v4050_v22 = vsel %vm7997_vm3, %v4018_v59, 0.0 }
 0x1aa   : > { %5428 = vmatmul.mubr.msk.f32.gmra.mrb[26].mxu1 %vm869_vm1, %v7519_v55 }
 0x1ab   : > { %5430 = vmatprep.mubr.msk.f32.mxu1 %vm869_vm1, %v7524_v35 }
 0x1ac   : > { %5631 = vmatmul.mubr.msk.f32.gmra.mrb[28].mxu0 %vm869_vm1, %v7995_v4 }
 0x1ad   : > { %5633 = vmatprep.mubr.msk.f32.mxu0 %vm869_vm1, %v4049_v1 }
 0x1ae   : > { %5431 = vmatmul.mubr.msk.f32.gmra.mrb[28].mxu1 %vm869_vm1, %v7533_v37 }
 0x1af   : > { %5433 = vmatprep.mubr.msk.f32.mxu1 %vm869_vm1, %v7538_v23 }
 0x1b0   : > { %5634 = vmatmul.mubr.msk.f32.gmra.mrb[30].mxu0 %vm869_vm1, %v4050_v22 }
 0x1b2   : > { %5434 = vmatmul.mubr.msk.f32.gmra.mrb[30].mxu1 %vm869_vm1, %v7547_v31 }
 0x229   : > { %v5340_v55 = vpop.f32.mrb[0].mxu1 }
 0x22a   : > { %v2172_v35 = vpop.f32.mrb[1].mxu1 }
 0x22d   : > { %v5343_v13 = vpop.f32.mrb[2].mxu1 }
 0x22e   : > { %v2182_v12 = vpop.f32.mrb[3].mxu1 }
 0x231   : > { %v5346_v24 = vpop.f32.mrb[4].mxu1 }
 0x232   : > { %v2192_v44 = vpop.f32.mrb[5].mxu1 }
 0x235   : > { %v5349_v56 = vpop.f32.mrb[6].mxu1 }
 0x236   : > { %v2202_v37 = vpop.f32.mrb[7].mxu1 }
 0x239   : > { %v5352_v52 = vpop.f32.mrb[8].mxu1 }
 0x23a   : > { %v2212_v34 = vpop.f32.mrb[9].mxu1 }
 0x23d   : > { %v5355_v28 = vpop.f32.mrb[10].mxu1 }
 0x23e   : > { %v2222_v62 = vpop.f32.mrb[11].mxu1 }
 0x241   : > { %v7697_v7 = vpop.f32.mrb[12].mxu1 }
 0x242   : > { %v7699_v23 = vpop.f32.mrb[13].mxu1 }
 0x245   : > { %v7701_v29 = vpop.f32.mrb[14].mxu1 }
 0x246   : > { %v7703_v31 = vpop.f32.mrb[15].mxu1 }
 0x247   : > { %v5590_v47 = vpop.f32.mrb[0].mxu0 }
 0x248   : > { %v5638_v3 = vadd.f32 %v5590_v47, %v5340_v55  ;;  %v4218_v30 = vpop.f32.mrb[1].mxu0 }
 0x249   : > { %v5639_v18 = vadd.f32 %v4218_v30, %v2172_v35 }
 0x24a   : > { %v4415_v43 = vmul.f32 %v5638_v3, %v7705_v63 }
 0x24b   : > { %v4414_v32 = vmul.f32 %v5639_v18, %v7705_v63  ;;  %v5593_v36 = vpop.f32.mrb[2].mxu0 }
 0x24c   : > { %v4454_v5 = vadd.f32 %v7711_v41, %v4415_v43  ;;  %v5640_v17 = vadd.f32 %v5593_v36, %v5343_v13  ;;  %v4228_v21 = vpop.f32.mrb[3].mxu0 }
 0x24d   : > { %v4453_v53 = vadd.f32 %v7711_v41, %v4414_v32  ;;  %v5641_v51 = vadd.f32 %v4228_v21, %v2182_v12 }
 0x24e   : > { %4486 = vst [vmem:[%s7717_s23 + $0x8] sm:$0xff] %v4454_v5  ;;  %v4417_v61 = vmul.f32 %v5640_v17, %v7705_v63 }
 0x24f   : > { %4485 = vst [vmem:[%s7717_s23] sm:$0xff] %v4453_v53  ;;  %v4416_v14 = vmul.f32 %v5641_v51, %v7705_v63  ;;  %v5596_v20 = vpop.f32.mrb[4].mxu0 }
 0x250   : > { %v4456_v11 = vadd.f32 %v7711_v41, %v4417_v61  ;;  %v5642_v48 = vadd.f32 %v5596_v20, %v5346_v24  ;;  %v4238_v38 = vpop.f32.mrb[5].mxu0 }
 0x251   : > { %v4455_v2 = vadd.f32 %v7711_v41, %v4416_v14  ;;  %v5643_v58 = vadd.f32 %v4238_v38, %v2192_v44 }
 0x252   : > { %4488 = vst [vmem:[%s7717_s23 + $0x18] sm:$0xff] %v4456_v11  ;;  %v4419_v46 = vmul.f32 %v5642_v48, %v7705_v63 }
 0x253   : > { %4487 = vst [vmem:[%s7717_s23 + $0x10] sm:$0xff] %v4455_v2  ;;  %v4418_v6 = vmul.f32 %v5643_v58, %v7705_v63  ;;  %v5599_v42 = vpop.f32.mrb[6].mxu0 }
 0x254   : > { %v4458_v40 = vadd.f32 %v7711_v41, %v4419_v46  ;;  %v5644_v27 = vadd.f32 %v5599_v42, %v5349_v56  ;;  %v4248_v26 = vpop.f32.mrb[7].mxu0 }
 0x255   : > { %v4457_v49 = vadd.f32 %v7711_v41, %v4418_v6  ;;  %v5645_v9 = vadd.f32 %v4248_v26, %v2202_v37 }
 0x256   : > { %4490 = vst [vmem:[%s7717_s23 + $0x28] sm:$0xff] %v4458_v40  ;;  %v4421_v16 = vmul.f32 %v5644_v27, %v7705_v63 }
 0x257   : > { %4489 = vst [vmem:[%s7717_s23 + $0x20] sm:$0xff] %v4457_v49  ;;  %v4420_v0 = vmul.f32 %v5645_v9, %v7705_v63  ;;  %v5602_v8 = vpop.f32.mrb[8].mxu0 }
 0x258   : > { %v4460_v19 = vadd.f32 %v7711_v41, %v4421_v16  ;;  %v5646_v57 = vadd.f32 %v5602_v8, %v5352_v52  ;;  %v4258_v10 = vpop.f32.mrb[9].mxu0 }
 0x259   : > { %v4459_v54 = vadd.f32 %v7711_v41, %v4420_v0  ;;  %v5647_v25 = vadd.f32 %v4258_v10, %v2212_v34 }
 0x25a   : > { %4492 = vst [vmem:[%s7717_s23 + $0x38] sm:$0xff] %v4460_v19  ;;  %v4423_v60 = vmul.f32 %v5646_v57, %v7705_v63 }
 0x25b   : > { %4491 = vst [vmem:[%s7717_s23 + $0x30] sm:$0xff] %v4459_v54  ;;  %v4422_v33 = vmul.f32 %v5647_v25, %v7705_v63  ;;  %v5605_v45 = vpop.f32.mrb[10].mxu0 }
 0x25c   : > { %v4462_v39 = vadd.f32 %v7711_v41, %v4423_v60  ;;  %v5648_v15 = vadd.f32 %v5605_v45, %v5355_v28  ;;  %v4268_v1 = vpop.f32.mrb[11].mxu0 }
 0x25d   : > { %v4461_v59 = vadd.f32 %v7711_v41, %v4422_v33  ;;  %v5649_v4 = vadd.f32 %v4268_v1, %v2222_v62 }
 0x25e   : > { %4494 = vst [vmem:[%s7717_s23 + $0x48] sm:$0xff] %v4462_v39  ;;  %v4425_v50 = vmul.f32 %v5648_v15, %v7705_v63 }
 0x25f   : > { %4493 = vst [vmem:[%s7717_s23 + $0x40] sm:$0xff] %v4461_v59  ;;  %v4424_v22 = vmul.f32 %v5649_v4, %v7705_v63  ;;  %v5608_v55 = vpop.f32.mrb[12].mxu0 }
 0x260   : > { %v4464_v35 = vadd.f32 %v7711_v41, %v4425_v50  ;;  %v5650_v13 = vadd.f32 %v5608_v55, %v7697_v7  ;;  %v4278_v12 = vpop.f32.mrb[13].mxu0 }
 0x261   : > { %v4463_v24 = vadd.f32 %v7711_v41, %v4424_v22  ;;  %v5651_v44 = vadd.f32 %v4278_v12, %v7699_v23 }
 0x262   : > { %4496 = vst [vmem:[%s7717_s23 + $0x58] sm:$0xff] %v4464_v35  ;;  %v4427_v56 = vmul.f32 %v5650_v13, %v7705_v63 }
 0x263   : > { %4495 = vst [vmem:[%s7717_s23 + $0x50] sm:$0xff] %v4463_v24  ;;  %v4426_v37 = vmul.f32 %v5651_v44, %v7705_v63  ;;  %v5611_v52 = vpop.f32.mrb[14].mxu0 }
 0x264   : > { %v4466_v34 = vadd.f32 %v7711_v41, %v4427_v56  ;;  %v5652_v28 = vadd.f32 %v5611_v52, %v7701_v29  ;;  %v4288_v62 = vpop.f32.mrb[15].mxu0 }
 0x265   : > { %v4465_v7 = vadd.f32 %v7711_v41, %v4426_v37  ;;  %v5653_v47 = vadd.f32 %v4288_v62, %v7703_v31 }
 0x266   : > { %4498 = vst [vmem:[%s7717_s23 + $0x68] sm:$0xff] %v4466_v34  ;;  %v4429_v23 = vmul.f32 %v5652_v28, %v7705_v63 }
 0x267   : > { %4497 = vst [vmem:[%s7717_s23 + $0x60] sm:$0xff] %v4465_v7  ;;  %v4428_v3 = vmul.f32 %v5653_v47, %v7705_v63  ;;  %v5614_v30 = vpop.f32.mrb[16].mxu0 }
 0x268   : > { %v4468_v18 = vadd.f32 %v7711_v41, %v4429_v23  ;;  %v4298_v43 = vpop.f32.mrb[17].mxu0 }
 0x269   : > { %v4467_v32 = vadd.f32 %v7711_v41, %v4428_v3  ;;  %v5414_v36 = vpop.f32.mrb[16].mxu1 }
 0x26a   : > { %4500 = vst [vmem:[%s7717_s23 + $0x78] sm:$0xff] %v4468_v18  ;;  %v5654_v29 = vadd.f32 %v5614_v30, %v5414_v36  ;;  %v2642_v5 = vpop.f32.mrb[17].mxu1 }
 0x26b   : > { %4499 = vst [vmem:[%s7717_s23 + $0x70] sm:$0xff] %v4467_v32  ;;  %v5655_v31 = vadd.f32 %v4298_v43, %v2642_v5  ;;  %v5617_v17 = vpop.f32.mrb[18].mxu0 }
 0x26c   : > { %v4431_v21 = vmul.f32 %v5654_v29, %v7705_v63  ;;  %v4308_v53 = vpop.f32.mrb[19].mxu0 }
 0x26d   : > { %v4430_v51 = vmul.f32 %v5655_v31, %v7705_v63  ;;  %v5417_v61 = vpop.f32.mrb[18].mxu1 }
 0x26e   : > { %v4470_v14 = vadd.f32 %v7711_v41, %v4431_v21  ;;  %v5656_v20 = vadd.f32 %v5617_v17, %v5417_v61  ;;  %v2652_v11 = vpop.f32.mrb[19].mxu1 }
 0x26f   : > { %v4469_v48 = vadd.f32 %v7711_v41, %v4430_v51  ;;  %v5657_v38 = vadd.f32 %v4308_v53, %v2652_v11  ;;  %v5620_v2 = vpop.f32.mrb[20].mxu0 }
 0x270   : > { %4502 = vst [vmem:[%s7717_s23 + $0x88] sm:$0xff] %v4470_v14  ;;  %v4433_v58 = vmul.f32 %v5656_v20, %v7705_v63  ;;  %v4318_v46 = vpop.f32.mrb[21].mxu0 }
 0x271   : > { %4501 = vst [vmem:[%s7717_s23 + $0x80] sm:$0xff] %v4469_v48  ;;  %v4432_v6 = vmul.f32 %v5657_v38, %v7705_v63  ;;  %v5420_v42 = vpop.f32.mrb[20].mxu1 }
 0x272   : > { %v4472_v40 = vadd.f32 %v7711_v41, %v4433_v58  ;;  %v5658_v27 = vadd.f32 %v5620_v2, %v5420_v42  ;;  %v2662_v26 = vpop.f32.mrb[21].mxu1 }
 0x273   : > { %v4471_v49 = vadd.f32 %v7711_v41, %v4432_v6  ;;  %v5659_v9 = vadd.f32 %v4318_v46, %v2662_v26  ;;  %v5623_v16 = vpop.f32.mrb[22].mxu0 }
 0x274   : > { %4504 = vst [vmem:[%s7717_s23 + $0x98] sm:$0xff] %v4472_v40  ;;  %v4435_v0 = vmul.f32 %v5658_v27, %v7705_v63  ;;  %v4328_v8 = vpop.f32.mrb[23].mxu0 }
 0x275   : > { %4503 = vst [vmem:[%s7717_s23 + $0x90] sm:$0xff] %v4471_v49  ;;  %v4434_v19 = vmul.f32 %v5659_v9, %v7705_v63  ;;  %v5423_v57 = vpop.f32.mrb[22].mxu1 }
 0x276   : > { %v4474_v10 = vadd.f32 %v7711_v41, %v4435_v0  ;;  %v5660_v54 = vadd.f32 %v5623_v16, %v5423_v57  ;;  %v2672_v25 = vpop.f32.mrb[23].mxu1 }
 0x277   : > { %v4473_v60 = vadd.f32 %v7711_v41, %v4434_v19  ;;  %v5661_v33 = vadd.f32 %v4328_v8, %v2672_v25  ;;  %v5626_v45 = vpop.f32.mrb[24].mxu0 }
 0x278   : > { %4506 = vst [vmem:[%s7717_s23 + $0xa8] sm:$0xff] %v4474_v10  ;;  %v4437_v39 = vmul.f32 %v5660_v54, %v7705_v63  ;;  %v4338_v15 = vpop.f32.mrb[25].mxu0 }
 0x279   : > { %4505 = vst [vmem:[%s7717_s23 + $0xa0] sm:$0xff] %v4473_v60  ;;  %v4436_v1 = vmul.f32 %v5661_v33, %v7705_v63  ;;  %v5426_v59 = vpop.f32.mrb[24].mxu1 }
 0x27a   : > { %v4476_v4 = vadd.f32 %v7711_v41, %v4437_v39  ;;  %v5662_v50 = vadd.f32 %v5626_v45, %v5426_v59  ;;  %v2682_v22 = vpop.f32.mrb[25].mxu1 }
 0x27b   : > { %v4475_v55 = vadd.f32 %v7711_v41, %v4436_v1  ;;  %v5663_v35 = vadd.f32 %v4338_v15, %v2682_v22  ;;  %v5629_v13 = vpop.f32.mrb[26].mxu0 }
 0x27c   : > { %4508 = vst [vmem:[%s7717_s23 + $0xb8] sm:$0xff] %v4476_v4  ;;  %v4439_v12 = vmul.f32 %v5662_v50, %v7705_v63  ;;  %v4348_v24 = vpop.f32.mrb[27].mxu0 }
 0x27d   : > { %4507 = vst [vmem:[%s7717_s23 + $0xb0] sm:$0xff] %v4475_v55  ;;  %v4438_v44 = vmul.f32 %v5663_v35, %v7705_v63  ;;  %v5429_v56 = vpop.f32.mrb[26].mxu1 }
 0x27e   : > { %v4478_v37 = vadd.f32 %v7711_v41, %v4439_v12  ;;  %v5664_v52 = vadd.f32 %v5629_v13, %v5429_v56  ;;  %v2692_v34 = vpop.f32.mrb[27].mxu1 }
 0x27f   : > { %v4477_v28 = vadd.f32 %v7711_v41, %v4438_v44  ;;  %v5665_v62 = vadd.f32 %v4348_v24, %v2692_v34  ;;  %v5632_v7 = vpop.f32.mrb[28].mxu0 }
 0x280   : > { %4510 = vst [vmem:[%s7717_s23 + $0xc8] sm:$0xff] %v4478_v37  ;;  %v4441_v47 = vmul.f32 %v5664_v52, %v7705_v63  ;;  %v4358_v23 = vpop.f32.mrb[29].mxu0 }
 0x281   : > { %4509 = vst [vmem:[%s7717_s23 + $0xc0] sm:$0xff] %v4477_v28  ;;  %v4440_v3 = vmul.f32 %v5665_v62, %v7705_v63  ;;  %v5432_v30 = vpop.f32.mrb[28].mxu1 }
 0x282   : > { %v4480_v18 = vadd.f32 %v7711_v41, %v4441_v47  ;;  %v5666_v43 = vadd.f32 %v5632_v7, %v5432_v30  ;;  %v2702_v32 = vpop.f32.mrb[29].mxu1 }
 0x283   : > { %v4479_v36 = vadd.f32 %v7711_v41, %v4440_v3  ;;  %v5667_v29 = vadd.f32 %v4358_v23, %v2702_v32  ;;  %v5635_v5 = vpop.f32.mrb[30].mxu0 }
 0x284   : > { %4512 = vst [vmem:[%s7717_s23 + $0xd8] sm:$0xff] %v4480_v18  ;;  %v4443_v31 = vmul.f32 %v5666_v43, %v7705_v63  ;;  %v4368_v17 = vpop.f32.mrb[31].mxu0 }
 0x285   : > { %4511 = vst [vmem:[%s7717_s23 + $0xd0] sm:$0xff] %v4479_v36  ;;  %v4442_v21 = vmul.f32 %v5667_v29, %v7705_v63  ;;  %v5435_v53 = vpop.f32.mrb[30].mxu1 }
 0x286   : > { %v4482_v51 = vadd.f32 %v7711_v41, %v4443_v31  ;;  %v5668_v61 = vadd.f32 %v5635_v5, %v5435_v53  ;;  %v2712_v14 = vpop.f32.mrb[31].mxu1 }
 0x287   : > { %v4481_v20 = vadd.f32 %v7711_v41, %v4442_v21  ;;  %v5669_v11 = vadd.f32 %v4368_v17, %v2712_v14 }
 0x288   : > { %4514 = vst [vmem:[%s7717_s23 + $0xe8] sm:$0xff] %v4482_v51  ;;  %v4445_v48 = vmul.f32 %v5668_v61, %v7705_v63 }
 0x289   : > { %4513 = vst [vmem:[%s7717_s23 + $0xe0] sm:$0xff] %v4481_v20  ;;  %v4444_v38 = vmul.f32 %v5669_v11, %v7705_v63 }
 0x28a   : > { %v4484_v2 = vadd.f32 %v7711_v41, %v4445_v48 }
 0x28b   : > { %v4483_v58 = vadd.f32 %v7711_v41, %v4444_v38 }
 0x28c   : > { %4516 = vst [vmem:[%s7717_s23 + $0xf8] sm:$0xff] %v4484_v2 }
 0x28d   : > { %4515 = vst [vmem:[%s7717_s23 + $0xf0] sm:$0xff] %v4483_v58 }
 0x28e PF: > { %s16_s20 = sadd.s32 1, %s5917_s20  }
 0x28f   : > { %p13_p4 = scmp.ge.s32.totalorder %s16_s20, 4  }
 0x291   :  { %15 = sbr.rel (!%p13_p4) target bundleno = 2 (0x2), region = 78 }

</bundles_post_ra>
